<compile_context>
chip_gen: v7x
topology: tpu7x:2x2x1
jax: 0.10.0
libtpu: 0.0.40
codegen_flags: <defaults>
</compile_context>

<pallas_src>
import jax
import jax.numpy as jnp
from jax import lax
from jax.experimental import pallas as pl
from jax.experimental.pallas import tpu as pltpu

# ----- problem sizes -----
B = 512           # batch (number of ranked pairs)
TILE_B = 256      # batch tile per grid step  [raised per perf review]
CLINE_DIM = 96    # cell-line expression feature dim (AE input)
CLINE_PAD = 128   # padded: lane 96 = constant 1 (carries AE bias), 97..127 = 0
AE_OUT = 64       # args.ae_out_size (cell_emb dim)
AE_PAD = 128      # padded AE output: col 64 = constant 1 (carries scoring bias), rest 0
FEAT_DIM = 200    # rdkit_2d fingerprint feature dim
FEAT_PAD = 256    # padded: lane 200 = constant 1 (carries ffn1 bias), 201..255 = 0
HID = 128         # Fingerprint.ffn1 hidden size
MOL_OUT = 32      # args.mol_out_size (compound embedding dim)


def ranknet_kernel(feat1_ref, feat2_ref, clines_ref, w1_ref, w2_ref, wae_ref, ws_ref,
                   score_ref):
    """One batch tile of the RankNet forward hot path.

    feat1_ref  : (TILE_B, FEAT_PAD)  bf16
    feat2_ref  : (TILE_B, FEAT_PAD)  bf16
    clines_ref : (TILE_B, CLINE_PAD) bf16
    w1_ref     : (FEAT_PAD, HID)     bf16  -- ffn1 weight with b1 folded into row FEAT_DIM
    w2_ref     : (HID, MOL_OUT)      bf16  -- ffn2 weight (b2 cancels in cmp1 - cmp2)
    wae_ref    : (CLINE_PAD, AE_PAD) bf16  -- AE encoder weight, b_ae folded, col AE_OUT == 1
    ws_ref     : (AE_PAD, MOL_OUT)   bf16  -- Scoring weight with bs folded into row AE_OUT
    score_ref  : (1, TILE_B)         f32   -- lane-dense score row
    """
    # --- Fingerprint towers: two dots against the VMEM-resident shared ffn1 weight ---
    h1 = jnp.maximum(jnp.dot(feat1_ref[...], w1_ref[...],
                             preferred_element_type=jnp.float32), 0.0)   # (TILE_B, HID)
    h2 = jnp.maximum(jnp.dot(feat2_ref[...], w1_ref[...],
                             preferred_element_type=jnp.float32), 0.0)   # (TILE_B, HID)
    # ffn2 applied once to the difference (b2 cancels exactly in cmp1 - cmp2)
    d = (h1 - h2).astype(jnp.bfloat16)
    cmp_diff = jnp.dot(d, w2_ref[...],
                       preferred_element_type=jnp.float32)               # (TILE_B, MOL_OUT)

    # --- AE encoder (approx: Linear + ReLU); col AE_OUT stays exactly 1.0 through relu ---
    cell = jnp.maximum(jnp.dot(clines_ref[...], wae_ref[...],
                               preferred_element_type=jnp.float32), 0.0) # (TILE_B, AE_PAD)

    # --- Scoring (linear): gate = cell @ ws + bs (bias rides on the constant-1 column) ---
    gate = jnp.dot(cell.astype(jnp.bfloat16), ws_ref[...],
                   preferred_element_type=jnp.float32)                   # (TILE_B, MOL_OUT)

    # --- score = sum_j gate * (cmp1 - cmp2), written lane-dense as a (1, TILE_B) row.
    #     Transpose-free: contract the MOL_OUT axes of a ones row against prod. ---
    prod = gate * cmp_diff                                               # (TILE_B, MOL_OUT)
    ones_row = jnp.ones((1, MOL_OUT), jnp.float32)
    score_ref[...] = lax.dot_general(ones_row, prod, (((1,), (1,)), ((), ())),
                                     preferred_element_type=jnp.float32)  # (1, TILE_B)


# ----------------------------- wrapper-side packing -----------------------------

def pack_params(p):
    """Fold biases into weights (constant-1 lane trick), pad, cast to bf16.
    Call ONCE (at model init) and reuse -- hoisted out of the per-forward path."""
    w1_aug = jnp.zeros((FEAT_PAD, HID), jnp.float32)
    w1_aug = w1_aug.at[:FEAT_DIM].set(p["w1"]).at[FEAT_DIM].set(p["b1"])

    w_ae_aug = jnp.zeros((CLINE_PAD, AE_PAD), jnp.float32)
    w_ae_aug = (w_ae_aug.at[:CLINE_DIM, :AE_OUT].set(p["w_ae"])
                        .at[CLINE_DIM, :AE_OUT].set(p["b_ae"])
                        .at[CLINE_DIM, AE_OUT].set(1.0))   # constant-1 output column

    ws_aug = jnp.zeros((AE_PAD, MOL_OUT), jnp.float32)
    ws_aug = ws_aug.at[:AE_OUT].set(p["ws"]).at[AE_OUT].set(p["bs"])

    return {
        "w1_aug": w1_aug.astype(jnp.bfloat16),
        "w2": p["w2"].astype(jnp.bfloat16),          # b2 dropped: cancels in cmp1 - cmp2
        "w_ae_aug": w_ae_aug.astype(jnp.bfloat16),
        "ws_aug": ws_aug.astype(jnp.bfloat16),
    }


def _pad_feat(f):
    b = f.shape[0]
    return jnp.concatenate(
        [f.astype(jnp.bfloat16),
         jnp.ones((b, 1), jnp.bfloat16),
         jnp.zeros((b, FEAT_PAD - FEAT_DIM - 1), jnp.bfloat16)], axis=1)


def _pad_cell(c):
    b = c.shape[0]
    return jnp.concatenate(
        [c.astype(jnp.bfloat16),
         jnp.ones((b, 1), jnp.bfloat16),
         jnp.zeros((b, CLINE_PAD - CLINE_DIM - 1), jnp.bfloat16)], axis=1)


def _forward_impl(clines, feat1, feat2, pk):
    """Returns (score, plabel, clabel, cmp_sim) matching RankNet.forward with output_type=2."""
    batch = clines.shape[0]
    nt = -(-batch // TILE_B)            # ceil division; remainder tile is zero-padded
    padded_b = nt * TILE_B

    f1 = _pad_feat(feat1)
    f2 = _pad_feat(feat2)
    cl = _pad_cell(clines)
    if padded_b != batch:
        pad = padded_b - batch
        f1 = jnp.pad(f1, ((0, pad), (0, 0)))
        f2 = jnp.pad(f2, ((0, pad), (0, 0)))
        cl = jnp.pad(cl, ((0, pad), (0, 0)))

    # Advisory cost hint for XLA's scheduler (~92 MFLOP, ~0.8 MB at B=512).
    flops = 2 * padded_b * (2 * FEAT_PAD * HID + HID * MOL_OUT
                            + CLINE_PAD * AE_PAD + AE_PAD * MOL_OUT + MOL_OUT)
    bytes_accessed = (2 * (2 * padded_b * FEAT_PAD + padded_b * CLINE_PAD
                           + FEAT_PAD * HID + HID * MOL_OUT
                           + CLINE_PAD * AE_PAD + AE_PAD * MOL_OUT)
                      + 4 * padded_b)

    score2d = pl.pallas_call(
        ranknet_kernel,
        out_shape=jax.ShapeDtypeStruct((1, padded_b), jnp.float32),
        grid_spec=pltpu.PrefetchScalarGridSpec(
            num_scalar_prefetch=0,
            grid=(nt,),
            in_specs=[
                pl.BlockSpec((TILE_B, FEAT_PAD), lambda i: (i, 0)),    # feat1 tile
                pl.BlockSpec((TILE_B, FEAT_PAD), lambda i: (i, 0)),    # feat2 tile
                pl.BlockSpec((TILE_B, CLINE_PAD), lambda i: (i, 0)),   # clines tile
                pl.BlockSpec((FEAT_PAD, HID), lambda i: (0, 0)),       # w1 (+b1) resident
                pl.BlockSpec((HID, MOL_OUT), lambda i: (0, 0)),        # w2 resident
                pl.BlockSpec((CLINE_PAD, AE_PAD), lambda i: (0, 0)),   # w_ae (+b_ae) resident
                pl.BlockSpec((AE_PAD, MOL_OUT), lambda i: (0, 0)),     # ws (+bs) resident
            ],
            out_specs=pl.BlockSpec((1, TILE_B), lambda i: (0, i)),     # lane-dense scores
        ),
        compiler_params=pltpu.CompilerParams(
            dimension_semantics=("parallel",)),   # batch axis -> both TCs on v7x
        cost_estimate=pl.CostEstimate(flops=flops, transcendentals=0,
                                      bytes_accessed=bytes_accessed),
    )(f1, f2, cl, pk["w1_aug"], pk["w2"], pk["w_ae_aug"], pk["ws_aug"])

    return score2d[0, :batch], None, None, None


ranknet_forward = jax.jit(_forward_impl)


# ----------------------------- params & references -----------------------------

def init_params(key):
    ks = jax.random.split(key, 7)
    scale = 0.05
    return {
        # AE encoder approximation: Linear(CLINE_DIM -> AE_OUT)  (TODO(synk): real AE unknown)
        "w_ae": scale * jax.random.normal(ks[0], (CLINE_DIM, AE_OUT), jnp.float32),
        "b_ae": scale * jax.random.normal(ks[1], (AE_OUT,), jnp.float32),
        # Fingerprint.ffn1: Linear(FEAT_DIM -> 128)
        "w1": scale * jax.random.normal(ks[2], (FEAT_DIM, HID), jnp.float32),
        "b1": scale * jax.random.normal(ks[3], (HID,), jnp.float32),
        # Fingerprint.ffn2: Linear(128 -> MOL_OUT)
        "w2": scale * jax.random.normal(ks[4], (HID, MOL_OUT), jnp.float32),
        "b2": scale * jax.random.normal(ks[5], (MOL_OUT,), jnp.float32),  # cancels in scoring
        # Scoring.ffn (linear): Linear(AE_OUT -> MOL_OUT)
        "ws": scale * jax.random.normal(ks[6], (AE_OUT, MOL_OUT), jnp.float32),
        "bs": jnp.zeros((MOL_OUT,), jnp.float32),
    }


def ranknet_reference_f32(clines, feat1, feat2, p):
    """Pure-f32 JAX reference of the RankNet forward semantics."""
    cell = jnp.maximum(clines @ p["w_ae"] + p["b_ae"], 0.0)
    c1 = jnp.maximum(feat1 @ p["w1"] + p["b1"], 0.0) @ p["w2"] + p["b2"]
    c2 = jnp.maximum(feat2 @ p["w1"] + p["b1"], 0.0) @ p["w2"] + p["b2"]
    gate = cell @ p["ws"] + p["bs"]
    return jnp.sum(gate * (c1 - c2), axis=1)


def ranknet_reference_mirrored(clines, feat1, feat2, pk):
    """Reference that mirrors the kernel's bf16 quantization exactly (tight check)."""
    f1 = _pad_feat(feat1)
    f2 = _pad_feat(feat2)
    cl = _pad_cell(clines)
    h1 = jnp.maximum(jnp.dot(f1, pk["w1_aug"], preferred_element_type=jnp.float32), 0.0)
    h2 = jnp.maximum(jnp.dot(f2, pk["w1_aug"], preferred_element_type=jnp.float32), 0.0)
    d = (h1 - h2).astype(jnp.bfloat16)
    cmp_diff = jnp.dot(d, pk["w2"], preferred_element_type=jnp.float32)
    cell = jnp.maximum(jnp.dot(cl, pk["w_ae_aug"], preferred_element_type=jnp.float32), 0.0)
    gate = jnp.dot(cell.astype(jnp.bfloat16), pk["ws_aug"], preferred_element_type=jnp.float32)
    return jnp.sum(gate * cmp_diff, axis=1)


if __name__ == "__main__":
    key = jax.random.PRNGKey(0)
    k_cl, k_f1, k_f2, k_p = jax.random.split(key, 4)

    clines = jax.random.normal(k_cl, (B, CLINE_DIM), jnp.float32)
    feat1 = jax.random.normal(k_f1, (B, FEAT_DIM), jnp.float32)
    feat2 = jax.random.normal(k_f2, (B, FEAT_DIM), jnp.float32)
    params = init_params(k_p)

    # Weight packing is done ONCE, outside the forward path (perf review item).
    packed = jax.tree_util.tree_map(jax.block_until_ready, pack_params(params))

    score, plabel, clabel, cmp_sim = ranknet_forward(clines, feat1, feat2, packed)
    score = jax.block_until_ready(score)
    assert score.shape == (B,)

    # Tight check: kernel vs. a reference with identical bf16 quantization.
    ref_mirror = ranknet_reference_mirrored(clines, feat1, feat2, packed)
    assert jnp.allclose(score, ref_mirror, atol=2e-3, rtol=2e-3), (score[:4], ref_mirror[:4])

    # Loose check: kernel vs. full-f32 semantics (tolerance covers bf16 weight/act rounding).
    ref_f32 = ranknet_reference_f32(clines, feat1, feat2, params)
    assert jnp.allclose(score, ref_f32, atol=1e-1, rtol=1e-1), (score[:4], ref_f32[:4])

    print("KERNEL_OK")
</pallas_src>

<mosaic_0001>
module attributes {stable_mosaic.version = 11 : i64} {
  func.func @ranknet_kernel(%arg0: i32, %arg1: memref<256x256xbf16, #tpu.memory_space<vmem>>, %arg2: memref<256x256xbf16, #tpu.memory_space<vmem>>, %arg3: memref<256x128xbf16, #tpu.memory_space<vmem>>, %arg4: memref<256x128xbf16, #tpu.memory_space<vmem>>, %arg5: memref<128x32xbf16, #tpu.memory_space<vmem>>, %arg6: memref<128x128xbf16, #tpu.memory_space<vmem>>, %arg7: memref<128x32xbf16, #tpu.memory_space<vmem>>, %arg8: memref<1x256xf32, #tpu.memory_space<vmem>>) attributes {dimension_semantics = [#tpu.dimension_semantics<parallel>], iteration_bounds = array<i64: 2>, scalar_prefetch = 0 : i64, scratch_operands = 0 : i64, tpu.core_type = #tpu.core_type<tc>, window_params = [{transform_indices = @transform_0, window_bounds = array<i64: 256, 256>}, {transform_indices = @transform_1, window_bounds = array<i64: 256, 256>}, {transform_indices = @transform_2, window_bounds = array<i64: 256, 128>}, {pipeline_mode = #tpu.pipeline_mode<synchronous>, transform_indices = @transform_3, window_bounds = array<i64: 256, 128>}, {pipeline_mode = #tpu.pipeline_mode<synchronous>, transform_indices = @transform_4, window_bounds = array<i64: 128, 32>}, {pipeline_mode = #tpu.pipeline_mode<synchronous>, transform_indices = @transform_5, window_bounds = array<i64: 128, 128>}, {pipeline_mode = #tpu.pipeline_mode<synchronous>, transform_indices = @transform_6, window_bounds = array<i64: 128, 32>}, {transform_indices = @transform_7, window_bounds = array<i64: 1, 256>}]} {
    %c0 = arith.constant 0 : index
    %c0_0 = arith.constant 0 : index
    %0 = vector.load %arg1[%c0, %c0_0] : memref<256x256xbf16, #tpu.memory_space<vmem>>, vector<256x256xbf16>
    %c0_1 = arith.constant 0 : index
    %c0_2 = arith.constant 0 : index
    %1 = vector.load %arg4[%c0_1, %c0_2] : memref<256x128xbf16, #tpu.memory_space<vmem>>, vector<256x128xbf16>
    %cst = arith.constant dense<0.000000e+00> : vector<256x128xf32>
    %2 = tpu.matmul %0, %1, %cst {dimension_numbers = #tpu.dot_dimension_numbers<[1], [0], [0], [1], [0, 0, 1, 1], [], []>} : vector<256x256xbf16>, vector<256x128xbf16>, vector<256x128xf32> -> vector<256x128xf32>
    %cst_3 = arith.constant 0.000000e+00 : f32
    %3 = vector.broadcast %cst_3 : f32 to vector<256x128xf32>
    %4 = arith.maximumf %2, %3 : vector<256x128xf32>
    %c0_4 = arith.constant 0 : index
    %c0_5 = arith.constant 0 : index
    %5 = vector.load %arg2[%c0_4, %c0_5] : memref<256x256xbf16, #tpu.memory_space<vmem>>, vector<256x256xbf16>
    %c0_6 = arith.constant 0 : index
    %c0_7 = arith.constant 0 : index
    %6 = vector.load %arg4[%c0_6, %c0_7] : memref<256x128xbf16, #tpu.memory_space<vmem>>, vector<256x128xbf16>
    %cst_8 = arith.constant dense<0.000000e+00> : vector<256x128xf32>
    %7 = tpu.matmul %5, %6, %cst_8 {dimension_numbers = #tpu.dot_dimension_numbers<[1], [0], [0], [1], [0, 0, 1, 1], [], []>} : vector<256x256xbf16>, vector<256x128xbf16>, vector<256x128xf32> -> vector<256x128xf32>
    %cst_9 = arith.constant 0.000000e+00 : f32
    %8 = vector.broadcast %cst_9 : f32 to vector<256x128xf32>
    %9 = arith.maximumf %7, %8 : vector<256x128xf32>
    %10 = arith.subf %4, %9 : vector<256x128xf32>
    %11 = arith.truncf %10 : vector<256x128xf32> to vector<256x128xbf16>
    %c0_10 = arith.constant 0 : index
    %c0_11 = arith.constant 0 : index
    %12 = vector.load %arg5[%c0_10, %c0_11] : memref<128x32xbf16, #tpu.memory_space<vmem>>, vector<128x32xbf16>
    %cst_12 = arith.constant dense<0.000000e+00> : vector<256x32xf32>
    %13 = tpu.matmul %11, %12, %cst_12 {dimension_numbers = #tpu.dot_dimension_numbers<[1], [0], [0], [1], [0, 0, 1, 1], [], []>} : vector<256x128xbf16>, vector<128x32xbf16>, vector<256x32xf32> -> vector<256x32xf32>
    %c0_13 = arith.constant 0 : index
    %c0_14 = arith.constant 0 : index
    %14 = vector.load %arg3[%c0_13, %c0_14] : memref<256x128xbf16, #tpu.memory_space<vmem>>, vector<256x128xbf16>
    %c0_15 = arith.constant 0 : index
    %c0_16 = arith.constant 0 : index
    %15 = vector.load %arg6[%c0_15, %c0_16] : memref<128x128xbf16, #tpu.memory_space<vmem>>, vector<128x128xbf16>
    %cst_17 = arith.constant dense<0.000000e+00> : vector<256x128xf32>
    %16 = tpu.matmul %14, %15, %cst_17 {dimension_numbers = #tpu.dot_dimension_numbers<[1], [0], [0], [1], [0, 0, 1, 1], [], []>} : vector<256x128xbf16>, vector<128x128xbf16>, vector<256x128xf32> -> vector<256x128xf32>
    %cst_18 = arith.constant 0.000000e+00 : f32
    %17 = vector.broadcast %cst_18 : f32 to vector<256x128xf32>
    %18 = arith.maximumf %16, %17 : vector<256x128xf32>
    %19 = arith.truncf %18 : vector<256x128xf32> to vector<256x128xbf16>
    %c0_19 = arith.constant 0 : index
    %c0_20 = arith.constant 0 : index
    %20 = vector.load %arg7[%c0_19, %c0_20] : memref<128x32xbf16, #tpu.memory_space<vmem>>, vector<128x32xbf16>
    %cst_21 = arith.constant dense<0.000000e+00> : vector<256x32xf32>
    %21 = tpu.matmul %19, %20, %cst_21 {dimension_numbers = #tpu.dot_dimension_numbers<[1], [0], [0], [1], [0, 0, 1, 1], [], []>} : vector<256x128xbf16>, vector<128x32xbf16>, vector<256x32xf32> -> vector<256x32xf32>
    %22 = arith.mulf %21, %13 : vector<256x32xf32>
    %cst_22 = arith.constant 1.000000e+00 : f32
    %23 = vector.broadcast %cst_22 : f32 to vector<1x32xf32>
    %cst_23 = arith.constant dense<0.000000e+00> : vector<1x256xf32>
    %24 = tpu.matmul %23, %22, %cst_23 {dimension_numbers = #tpu.dot_dimension_numbers<[1], [1], [0], [0], [0, 0, 1, 0], [], []>} : vector<1x32xf32>, vector<256x32xf32>, vector<1x256xf32> -> vector<1x256xf32>
    %c0_24 = arith.constant 0 : index
    %c0_25 = arith.constant 0 : index
    %25 = vector.load %arg8[%c0_24, %c0_25] : memref<1x256xf32, #tpu.memory_space<vmem>>, vector<1x256xf32>
    tpu.vector_store %arg8[%c0_24, %c0_25], %24 {strides = array<i32>} : memref<1x256xf32, #tpu.memory_space<vmem>>, vector<1x256xf32>,
    return
  }
  func.func @transform_0(%arg0: i32) -> (i32, i32) {
    %c0_i32 = arith.constant 0 : i32
    %c0_i32_0 = arith.constant 0 : i32
    return %arg0, %c0_i32 : i32, i32
  }
  func.func @transform_1(%arg0: i32) -> (i32, i32) {
    %c0_i32 = arith.constant 0 : i32
    %c0_i32_0 = arith.constant 0 : i32
    return %arg0, %c0_i32 : i32, i32
  }
  func.func @transform_2(%arg0: i32) -> (i32, i32) {
    %c0_i32 = arith.constant 0 : i32
    %c0_i32_0 = arith.constant 0 : i32
    return %arg0, %c0_i32 : i32, i32
  }
  func.func @transform_3(%arg0: i32) -> (i32, i32) {
    %c0_i32 = arith.constant 0 : i32
    %c0_i32_0 = arith.constant 0 : i32
    %c0_i32_1 = arith.constant 0 : i32
    return %c0_i32, %c0_i32_0 : i32, i32
  }
  func.func @transform_4(%arg0: i32) -> (i32, i32) {
    %c0_i32 = arith.constant 0 : i32
    %c0_i32_0 = arith.constant 0 : i32
    %c0_i32_1 = arith.constant 0 : i32
    return %c0_i32, %c0_i32_0 : i32, i32
  }
  func.func @transform_5(%arg0: i32) -> (i32, i32) {
    %c0_i32 = arith.constant 0 : i32
    %c0_i32_0 = arith.constant 0 : i32
    %c0_i32_1 = arith.constant 0 : i32
    return %c0_i32, %c0_i32_0 : i32, i32
  }
  func.func @transform_6(%arg0: i32) -> (i32, i32) {
    %c0_i32 = arith.constant 0 : i32
    %c0_i32_0 = arith.constant 0 : i32
    %c0_i32_1 = arith.constant 0 : i32
    return %c0_i32, %c0_i32_0 : i32, i32
  }
  func.func @transform_7(%arg0: i32) -> (i32, i32) {
    %c0_i32 = arith.constant 0 : i32
    %c0_i32_0 = arith.constant 0 : i32
    return %c0_i32, %arg0 : i32, i32
  }
}

</mosaic_0001>

<bundles_post_ra>
// kernel: _forward_impl.1
= control target key start
LH: loop header
LB: loop body
LE: loop exit
PB: predicated region body
PF: predicated region fallthrough
CT: control target
= control target key end

     0   :  { %12 = vsyncpa [#allocation3], 0  ;;  %s3960_s0 = inlined_call_operand.vmem [shape: bf16[512,256], index: 0, kind: input, shape index: {}]   ;;  %s3961_s1 = inlined_call_operand.vmem [shape: bf16[512,256], index: 1, kind: input, shape index: {}]   ;;  %s3962_s2 = inlined_call_operand.vmem [shape: bf16[512,128], index: 2, kind: input, shape index: {}]   ;;  %s3963_s3 = inlined_call_operand.vmem [shape: bf16[256,128], index: 3, kind: input, shape index: {}]   ;;  %s3964_s4 = inlined_call_operand.vmem [shape: bf16[128,32], index: 4, kind: input, shape index: {}]   ;;  %s3965_s5 = inlined_call_operand.vmem [shape: bf16[128,128], index: 5, kind: input, shape index: {}]   ;;  %s3966_s6 = inlined_call_operand.vmem [shape: bf16[128,32], index: 6, kind: input, shape index: {}]   ;;  %s3967_s7 = inlined_call_operand.hbm [shape: f32[1,512], index: 7, kind: output, shape index: {}]  }
   0x1   :  { %14 = vsyncpa [#allocation3 + $0x1], 0  ;;  %s3464_s24 = smov 0   ;;  %s3466_s25 = smov 0  }
   0x2   :  { %s3468_s26 = smov 0   ;;  %s3470_s27 = smov 0  }
   0x3 LB: > { %s2451_s28 = sadd.s32 4294967295, %s3419_s27   ;;  %s2452_s29 = sadd.s32 4294967294, %s3419_s27   ;;  %s3419_s27 = sphi %s3470_s27, %s3975_s27   ;;  %s3415_s26 = sphi %s3468_s26, %s3974_s26   ;;  %s3411_s25 = sphi %s3466_s25, %s3973_s25   ;;  %s3407_s24 = sphi %s3464_s24, %s3972_s24  }
   0x4   : > { %s3487_s30 = sadd.s32 1, %s3419_s27   ;;  %s189_s8 = sadd.s32 1, %s3415_s26 }
   0x5   : > { %s186_s9 = ssub.s32 %s3419_s27, %s3487_s30  ;;  %p199_p0 = scmp.ne.s32.totalorder %s3415_s26, %s3411_s25 }
   0x6   : > { %p187_p1 = scmp.eq.s32.totalorder %s186_s9, 0  ;;  %p200_p2 = scmp.eq.s32.totalorder %s2451_s28, 1 }
   0x7   : > { %p205_p3 = scmp.ne.s32.totalorder %s3411_s25, %s3407_s24  ;;  %p206_p4 = scmp.eq.s32.totalorder %s2452_s29, 1 }
   0x8   : > { %s3497_s10 = scalar_select %p187_p1, %s3415_s26, %s189_s8  }
   0x9   : > { %p3499_p5 = por %p200_p2, %p199_p0  ;;  %p3503_p6 = por %p206_p4, %p205_p3 }
   0xa   : > { %p2455_p7 = scmp.ge.s32.totalorder %s3419_s27, 1  ;;  %p265_p8 = scmp.lt.s32.totalorder %s3419_s27, 3 }
   0xc   : > { %p266_p9 = pnand %p2455_p7, %p265_p8 }
   0xd   : > { %v3205_v0 = vld [vmem:[%s3963_s3 + $0x40] sm:$0xff] (!%p266_p9)   ;;  %s3512_s15 = sshll.u32 (!%p266_p9), %s2451_s28, 5  ;;  %v3207_v2 = vld [vmem:[%s3963_s3 + $0x48] sm:$0xff] (!%p266_p9)   ;;  %v3209_v4 = vld [vmem:[%s3963_s3 + $0x50] sm:$0xff] (!%p266_p9)   ;;  %vm2160_vm0 = vcmask (!%p266_p9), 261120   ;;  %s306_s16 = sand.u32 (!%p266_p9), 1, %s3411_s25  }
   0xe   : > { %269 = sbr.rel (%p266_p9) target bundleno = 1165 (0x48d), region = 48  ;;  %v3206_v1 = vld [vmem:[%s3963_s3] sm:$0xff] (!%p266_p9)   ;;  %2626 = vmatprep.subr.bf16.mxu0 (!%p266_p9), %v3205_v0  ;;  %2738 = vmatprep.subr.bf16.mxu1 (!%p266_p9), %v3205_v0  ;;  %v3208_v3 = vld [vmem:[%s3963_s3 + $0x8] sm:$0xff] (!%p266_p9)   ;;  %p310_p10 = scmp.lt.s32.totalorder (!%p266_p9), %s3512_s15, 63  ;;  %v3210_v5 = vld [vmem:[%s3963_s3 + $0x10] sm:$0xff] (!%p266_p9)  }
   0xf   : > { %2627 = vmatpush3.bf16.msra.mxu0 (!%p266_p9), %v3206_v1  ;;  %2739 = vmatpush3.bf16.msra.mxu1 (!%p266_p9), %v3206_v1  ;;  %v3211_v6 = vld [vmem:[%s3963_s3 + $0x58] sm:$0xff] (!%p266_p9)   ;;  %v3213_v8 = vld [vmem:[%s3963_s3 + $0x60] sm:$0xff] (!%p266_p9)   ;;  %v3215_v10 = vld [vmem:[%s3963_s3 + $0x68] sm:$0xff] (!%p266_p9)   ;;  %s2456_s18 = sshll.u32 (!%p266_p9), %s306_s16, 1  ;;  %s3918_s21 = scalar_lea.hbm (!%p266_p9), %s3967_s7, %s3512_s15 }
  0x10   : > { %2628 = vmatprep.subr.bf16.mxu0 (!%p266_p9), %v3207_v2  ;;  %2740 = vmatprep.subr.bf16.mxu1 (!%p266_p9), %v3207_v2  ;;  %v3212_v7 = vld [vmem:[%s3963_s3 + $0x18] sm:$0xff] (!%p266_p9)   ;;  %v3214_v9 = vld [vmem:[%s3963_s3 + $0x20] sm:$0xff] (!%p266_p9)   ;;  %v3216_v13 = vld [vmem:[%s3963_s3 + $0x28] sm:$0xff] (!%p266_p9)   ;;  %s308_s19 = scalar_lea.vmem (!%p266_p9), [#allocation2], %s2456_s18  ;;  %s2355_s23 = scalar_lea.sflag (!%p266_p9), [#allocation3], %s306_s16 }
  0x11   : > { %v3217_v14 = vld [vmem:[%s3963_s3 + $0x70] sm:$0xff] (!%p266_p9)   ;;  %v3219_v16 = vld [vmem:[%s3963_s3 + $0x78] sm:$0xff] (!%p266_p9)   ;;  %v3317_v34 = vld [vmem:[%s3964_s4] sm:$0xff] (!%p266_p9)  }
  0x12   : > { %v3218_v15 = vld [vmem:[%s3963_s3 + $0x30] sm:$0xff] (!%p266_p9)   ;;  %v3220_v17 = vld [vmem:[%s3963_s3 + $0x38] sm:$0xff] (!%p266_p9)   ;;  %v3318_v37 = vld [vmem:[%s3964_s4 + $0x8] sm:$0xff] (!%p266_p9)  }
  0x13   : > { %2629 = vmatpush3.bf16.msra.mxu0 (!%p266_p9), %v3208_v3  ;;  %2741 = vmatpush3.bf16.msra.mxu1 (!%p266_p9), %v3208_v3  ;;  %v3319_v40 = vld [vmem:[%s3964_s4 + $0x10] sm:$0xff] (!%p266_p9)   ;;  %v3320_v1 = vld [vmem:[%s3964_s4 + $0x18] sm:$0xff] (!%p266_p9)   ;;  %vm3857_vm1 = vmpackc.low (!%p266_p9), %vm2160_vm0, %vm2160_vm0 }
  0x14   : > { %2630 = vmatprep.subr.bf16.mxu0 (!%p266_p9), %v3209_v4  ;;  %2742 = vmatprep.subr.bf16.mxu1 (!%p266_p9), %v3209_v4 }
  0x15   : > { %s3531_s8 = scalar_select %p310_p10, %s3512_s15, 63 }
  0x17   : > { %2631 = vmatpush3.bf16.msra.mxu0 %v3210_v5  ;;  %2743 = vmatpush3.bf16.msra.mxu1 %v3210_v5  ;;  %s2623_s17 = sshll.u32 %s3531_s8, 3 }
  0x18   : > { %2632 = vmatprep.subr.bf16.mxu0 %v3211_v6  ;;  %2744 = vmatprep.subr.bf16.mxu1 %v3211_v6  ;;  %s3546_s22 = scalar_lea.vmem %s3960_s0, %s2623_s17  ;;  %s3554_s13 = scalar_lea.vmem %s3961_s1, %s2623_s17  ;;  %v3321_v6 = vld [vmem:[%s3964_s4 + $0x20] sm:$0xff]  }
  0x19   : > { %v3223_v11 = vld [vmem:[%s3546_s22 + $0x4] ss:$8 sps:$4 sm:$0xff]   ;;  %v3221_v18 = vld [vmem:[%s3546_s22] ss:$8 sps:$4 sm:$0xff]   ;;  %v3227_v20 = vld [vmem:[%s3546_s22 + $0x14] ss:$8 sps:$4 sm:$0xff]  }
  0x1a   : > { %v3226_v12 = vld [vmem:[%s3554_s13 + $0x4] ss:$8 sps:$4 sm:$0xff]   ;;  %683 = vmatprep.mubr.bf16.mxu0 %v3223_v11  ;;  %v3224_v19 = vld [vmem:[%s3554_s13] ss:$8 sps:$4 sm:$0xff]   ;;  %v3229_v21 = vld [vmem:[%s3554_s13 + $0x14] ss:$8 sps:$4 sm:$0xff]  }
  0x1b   : > { %2633 = vmatpush3.bf16.msra.mxu0 %v3212_v7  ;;  %2745 = vmatpush3.bf16.msra.mxu1 %v3212_v7  ;;  %v3231_v22 = vld [vmem:[%s3546_s22 + $0x10] ss:$8 sps:$4 sm:$0xff]   ;;  %v3233_v24 = vld [vmem:[%s3546_s22 + $0x24] ss:$8 sps:$4 sm:$0xff]   ;;  %v3237_v26 = vld [vmem:[%s3546_s22 + $0x20] ss:$8 sps:$4 sm:$0xff]  }
  0x1c   : > { %2634 = vmatprep.subr.bf16.mxu0 %v3213_v8  ;;  %2746 = vmatprep.subr.bf16.mxu1 %v3213_v8  ;;  %v3232_v23 = vld [vmem:[%s3554_s13 + $0x10] ss:$8 sps:$4 sm:$0xff]   ;;  %v3235_v25 = vld [vmem:[%s3554_s13 + $0x24] ss:$8 sps:$4 sm:$0xff]   ;;  %v3238_v27 = vld [vmem:[%s3554_s13 + $0x20] ss:$8 sps:$4 sm:$0xff]  }
  0x1d   : > { %1068 = vmatprep.mubr.bf16.mxu1 %v3226_v12  ;;  %v3239_v28 = vld [vmem:[%s3546_s22 + $0x34] ss:$8 sps:$4 sm:$0xff]   ;;  %v3243_v30 = vld [vmem:[%s3546_s22 + $0x30] ss:$8 sps:$4 sm:$0xff]   ;;  %v3245_v32 = vld [vmem:[%s3546_s22 + $0x44] ss:$8 sps:$4 sm:$0xff]  }
  0x1e   : > { %v3241_v29 = vld [vmem:[%s3554_s13 + $0x34] ss:$8 sps:$4 sm:$0xff]   ;;  %v3244_v31 = vld [vmem:[%s3554_s13 + $0x30] ss:$8 sps:$4 sm:$0xff]   ;;  %v3247_v33 = vld [vmem:[%s3554_s13 + $0x44] ss:$8 sps:$4 sm:$0xff]  }
  0x1f   : > { %2635 = vmatpush3.bf16.msra.mxu0 %v3214_v9  ;;  %2747 = vmatpush3.bf16.msra.mxu1 %v3214_v9  ;;  %v3249_v35 = vld [vmem:[%s3546_s22 + $0x40] ss:$8 sps:$4 sm:$0xff]   ;;  %v3251_v38 = vld [vmem:[%s3546_s22 + $0x54] ss:$8 sps:$4 sm:$0xff]   ;;  %v3255_v41 = vld [vmem:[%s3546_s22 + $0x50] ss:$8 sps:$4 sm:$0xff]  }
  0x20   : > { %2636 = vmatprep.subr.bf16.mxu0 %v3215_v10  ;;  %2748 = vmatprep.subr.bf16.mxu1 %v3215_v10  ;;  %v3250_v36 = vld [vmem:[%s3554_s13 + $0x40] ss:$8 sps:$4 sm:$0xff]   ;;  %v3253_v39 = vld [vmem:[%s3554_s13 + $0x54] ss:$8 sps:$4 sm:$0xff]   ;;  %v3256_v42 = vld [vmem:[%s3554_s13 + $0x50] ss:$8 sps:$4 sm:$0xff]  }
  0x21   : > { %v3257_v43 = vld [vmem:[%s3546_s22 + $0x64] ss:$8 sps:$4 sm:$0xff]   ;;  %v3261_v45 = vld [vmem:[%s3546_s22 + $0x60] ss:$8 sps:$4 sm:$0xff]   ;;  %v3263_v47 = vld [vmem:[%s3546_s22 + $0x74] ss:$8 sps:$4 sm:$0xff]  }
  0x22   : > { %v3259_v44 = vld [vmem:[%s3554_s13 + $0x64] ss:$8 sps:$4 sm:$0xff]   ;;  %v3262_v46 = vld [vmem:[%s3554_s13 + $0x60] ss:$8 sps:$4 sm:$0xff]   ;;  %v3265_v48 = vld [vmem:[%s3554_s13 + $0x74] ss:$8 sps:$4 sm:$0xff]  }
  0x23   : > { %2637 = vmatpush3.bf16.msra.mxu0 %v3216_v13  ;;  %2749 = vmatpush3.bf16.msra.mxu1 %v3216_v13  ;;  %v3267_v49 = vld [vmem:[%s3546_s22 + $0x70] ss:$8 sps:$4 sm:$0xff]   ;;  %v3269_v51 = vld [vmem:[%s3546_s22 + $0x84] ss:$8 sps:$4 sm:$0xff]   ;;  %v3273_v53 = vld [vmem:[%s3546_s22 + $0x80] ss:$8 sps:$4 sm:$0xff]  }
  0x24   : > { %2638 = vmatprep.subr.bf16.mxu0 %v3217_v14  ;;  %2750 = vmatprep.subr.bf16.mxu1 %v3217_v14  ;;  %v3268_v50 = vld [vmem:[%s3554_s13 + $0x70] ss:$8 sps:$4 sm:$0xff]   ;;  %v3271_v52 = vld [vmem:[%s3554_s13 + $0x84] ss:$8 sps:$4 sm:$0xff]   ;;  %v3274_v54 = vld [vmem:[%s3554_s13 + $0x80] ss:$8 sps:$4 sm:$0xff]  }
  0x25   : > { %v3275_v55 = vld [vmem:[%s3546_s22 + $0x94] ss:$8 sps:$4 sm:$0xff]   ;;  %v3279_v57 = vld [vmem:[%s3546_s22 + $0x90] ss:$8 sps:$4 sm:$0xff]   ;;  %v3281_v59 = vld [vmem:[%s3546_s22 + $0xa4] ss:$8 sps:$4 sm:$0xff]  }
  0x26   : > { %v3277_v56 = vld [vmem:[%s3554_s13 + $0x94] ss:$8 sps:$4 sm:$0xff]   ;;  %v3280_v58 = vld [vmem:[%s3554_s13 + $0x90] ss:$8 sps:$4 sm:$0xff]   ;;  %v3283_v60 = vld [vmem:[%s3554_s13 + $0xa4] ss:$8 sps:$4 sm:$0xff]  }
  0x27   : > { %2639 = vmatpush3.bf16.msra.mxu0 %v3218_v15  ;;  %2751 = vmatpush3.bf16.msra.mxu1 %v3218_v15  ;;  %v3285_v61 = vld [vmem:[%s3546_s22 + $0xa0] ss:$8 sps:$4 sm:$0xff]   ;;  %v3287_v63 = vld [vmem:[%s3546_s22 + $0xb4] ss:$8 sps:$4 sm:$0xff]   ;;  %v3291_v2 = vld [vmem:[%s3546_s22 + $0xb0] ss:$8 sps:$4 sm:$0xff]  }
  0x28   : > { %2640 = vmatprep.subr.bf16.mxu0 %v3219_v16  ;;  %2752 = vmatprep.subr.bf16.mxu1 %v3219_v16  ;;  %v3286_v62 = vld [vmem:[%s3554_s13 + $0xa0] ss:$8 sps:$4 sm:$0xff]   ;;  %v3289_v0 = vld [vmem:[%s3554_s13 + $0xb4] ss:$8 sps:$4 sm:$0xff]   ;;  %v3292_v3 = vld [vmem:[%s3554_s13 + $0xb0] ss:$8 sps:$4 sm:$0xff]  }
  0x29   : > { %v3293_v4 = vld [vmem:[%s3546_s22 + $0xc4] ss:$8 sps:$4 sm:$0xff]   ;;  %v3297_v8 = vld [vmem:[%s3546_s22 + $0xc0] ss:$8 sps:$4 sm:$0xff]   ;;  %v3299_v10 = vld [vmem:[%s3546_s22 + $0xd4] ss:$8 sps:$4 sm:$0xff]  }
  0x2a   : > { %v3295_v5 = vld [vmem:[%s3554_s13 + $0xc4] ss:$8 sps:$4 sm:$0xff]   ;;  %v3298_v9 = vld [vmem:[%s3554_s13 + $0xc0] ss:$8 sps:$4 sm:$0xff]   ;;  %v3301_v11 = vld [vmem:[%s3554_s13 + $0xd4] ss:$8 sps:$4 sm:$0xff]  }
  0x2b   : > { %2641 = vmatpush3.bf16.msra.mxu0 %v3220_v17  ;;  %2753 = vmatpush3.bf16.msra.mxu1 %v3220_v17  ;;  %v3322_v7 = vld [vmem:[%s3964_s4 + $0x28] sm:$0xff]   ;;  %v3323_v12 = vld [vmem:[%s3964_s4 + $0x30] sm:$0xff]   ;;  %v3324_v13 = vld [vmem:[%s3964_s4 + $0x38] sm:$0xff]   ;;  %s2369_s17 = sshll.u32 %s308_s19, 4  ;;  %s3920_s17 = int_to_ptr.vmem [resolvable:$true] %s2369_s17 }
  0x2c   : > { %3148 = vmatprep.subr.bf16.mxu1 %v3317_v34  ;;  %2956 = vmatprep.subr.bf16.mxu0 %v3317_v34  ;;  %v3303_v14 = vld [vmem:[%s3546_s22 + $0xd0] ss:$8 sps:$4 sm:$0xff]   ;;  %v3305_v16 = vld [vmem:[%s3546_s22 + $0xe4] ss:$8 sps:$4 sm:$0xff]  }
  0x2d   : > { %v3304_v15 = vld [vmem:[%s3554_s13 + $0xd0] ss:$8 sps:$4 sm:$0xff]   ;;  %v3307_v17 = vld [vmem:[%s3554_s13 + $0xe4] ss:$8 sps:$4 sm:$0xff]  }
  0x2e   : > { %684 = vmatmul.mubr.bf16.vlgmr.msra.gmra.mrb[0].mxu0 %v3221_v18  ;;  %1069 = vmatmul.mubr.bf16.vlgmr.msra.gmra.mrb[0].mxu1 %v3224_v19  ;;  %v3309_v18 = vld [vmem:[%s3546_s22 + $0xe0] ss:$8 sps:$4 sm:$0xff]  }
  0x2f   : > { %691 = vmatprep.mubr.bf16.mxu0 %v3227_v20  ;;  %1076 = vmatprep.mubr.bf16.mxu1 %v3229_v21  ;;  %v3310_v19 = vld [vmem:[%s3554_s13 + $0xe0] ss:$8 sps:$4 sm:$0xff]   ;;  %v3311_v20 = vld [vmem:[%s3546_s22 + $0xf4] ss:$8 sps:$4 sm:$0xff]  }
  0x30   : > { %3156 = vmatpush3.bf16.msra.mxu1 %v3317_v34  ;;  %2957 = vmatpush3.bf16.msra.mxu0 %v3317_v34  ;;  %v3313_v21 = vld [vmem:[%s3554_s13 + $0xf4] ss:$8 sps:$4 sm:$0xff]  }
  0x31   : > { %2958 = vmatprep.subr.bf16.mxu0 %v3318_v37  ;;  %3149 = vmatprep.subr.bf16.mxu1 %v3318_v37 }
  0x34   : > { %2959 = vmatpush3.bf16.msra.mxu0 %v3318_v37  ;;  %3157 = vmatpush3.bf16.msra.mxu1 %v3318_v37 }
  0x35   : > { %2960 = vmatprep.subr.bf16.mxu0 %v3319_v40  ;;  %3150 = vmatprep.subr.bf16.mxu1 %v3319_v40 }
  0x36   : > { %692 = vmatmul.mubr.bf16.gmra.mrb[4].mxu0 %v3231_v22  ;;  %1077 = vmatmul.mubr.bf16.gmra.mrb[4].mxu1 %v3232_v23  ;;  %v3315_v22 = vld [vmem:[%s3546_s22 + $0xf0] ss:$8 sps:$4 sm:$0xff]   ;;  %s2464_s22 = sshll.u32 %s3531_s8, 2 }
  0x37   : > { %699 = vmatprep.mubr.bf16.mxu0 %v3233_v24  ;;  %1084 = vmatprep.mubr.bf16.mxu1 %v3235_v25  ;;  %v3316_v23 = vld [vmem:[%s3554_s13 + $0xf0] ss:$8 sps:$4 sm:$0xff]   ;;  %v3665_v24 = vld [vmem:[%s3965_s5] sm:$0xff]   ;;  %s3672_s29 = scalar_lea.vmem %s3962_s2, %s2464_s22  ;;  %s3357_s22 = scalar_lea.vmem %s3920_s17, 32 }
  0x38   : > { %2961 = vmatpush3.bf16.msra.mxu0 %v3319_v40  ;;  %3158 = vmatpush3.bf16.msra.mxu1 %v3319_v40  ;;  %p3358_p11 = scmp.ne.s32.totalorder %s3920_s17, %s3357_s22  ;;  %s3423_s13 = smov [#allocation2]  }
  0x39   : > { %2962 = vmatprep.subr.bf16.mxu0 %v3320_v1  ;;  %3151 = vmatprep.subr.bf16.mxu1 %v3320_v1  ;;  %s3361_s28 = sshll.u32 %s3423_s13, 4  ;;  %s3362_s28 = int_to_ptr.vmem [resolvable:$false] %s3361_s28 }
  0x3a   : > { %p3359_p12 = pnand %p3358_p11, %p3499_p5  ;;  %s3363_s8 = scalar_lea.vmem %s3362_s28, 64 }
  0x3b   : > { %p3364_p0 = scmp.lt.s32.totalorder %s3920_s17, %s3362_s28  ;;  %p3365_p1 = scmp.lt.s32.totalorder %s3363_s8, %s3357_s22 }
  0x3c   : > { %2963 = vmatpush3.bf16.msra.mxu0 %v3320_v1  ;;  %3159 = vmatpush3.bf16.msra.mxu1 %v3320_v1  ;;  %p3360_p13 = pneg %p3359_p12 }
  0x3d   : > { %2964 = vmatprep.subr.bf16.mxu0 %v3321_v6  ;;  %3152 = vmatprep.subr.bf16.mxu1 %v3321_v6  ;;  %p3366_p2 = por %p3365_p1, %p3364_p0 }
  0x3e   : > { %700 = vmatmul.mubr.bf16.gmra.mrb[8].mxu0 %v3237_v26  ;;  %1085 = vmatmul.mubr.bf16.gmra.mrb[8].mxu1 %v3238_v27 }
  0x3f   : > { %707 = vmatprep.mubr.bf16.mxu0 %v3239_v28  ;;  %1092 = vmatprep.mubr.bf16.mxu1 %v3241_v29  ;;  %p3367_p3 = pnand %p3366_p2, %p3360_p13 }
  0x40   : > { %2965 = vmatpush3.bf16.msra.mxu0 %v3321_v6  ;;  %3160 = vmatpush3.bf16.msra.mxu1 %v3321_v6 }
  0x41   : > { %2966 = vmatprep.subr.bf16.mxu0 %v3322_v7  ;;  %3153 = vmatprep.subr.bf16.mxu1 %v3322_v7 }
  0x44   : > { %2967 = vmatpush3.bf16.msra.mxu0 %v3322_v7  ;;  %3161 = vmatpush3.bf16.msra.mxu1 %v3322_v7 }
  0x45   : > { %2968 = vmatprep.subr.bf16.mxu0 %v3323_v12  ;;  %3154 = vmatprep.subr.bf16.mxu1 %v3323_v12 }
  0x46   : > { %708 = vmatmul.mubr.bf16.gmra.mrb[12].mxu0 %v3243_v30  ;;  %1093 = vmatmul.mubr.bf16.gmra.mrb[12].mxu1 %v3244_v31 }
  0x47   : > { %715 = vmatprep.mubr.bf16.mxu0 %v3245_v32  ;;  %1100 = vmatprep.mubr.bf16.mxu1 %v3247_v33 }
  0x48   : > { %2969 = vmatpush3.bf16.msra.mxu0 %v3323_v12  ;;  %3162 = vmatpush3.bf16.msra.mxu1 %v3323_v12 }
  0x49   : > { %2970 = vmatprep.subr.bf16.mxu0 %v3324_v13  ;;  %3155 = vmatprep.subr.bf16.mxu1 %v3324_v13 }
  0x4c   : > { %2971 = vmatpush3.bf16.msra.mxu0 %v3324_v13  ;;  %3163 = vmatpush3.bf16.msra.mxu1 %v3324_v13 }
  0x4d   : > { %3004 = vmatprep.subr.bf16.mxu1 %v3665_v24 }
  0x4e   : > { %716 = vmatmul.mubr.bf16.gmra.mrb[16].mxu0 %v3249_v35  ;;  %1101 = vmatmul.mubr.bf16.gmra.mrb[16].mxu1 %v3250_v36 }
  0x4f   : > { %723 = vmatprep.mubr.bf16.mxu0 %v3251_v38  ;;  %1108 = vmatprep.mubr.bf16.mxu1 %v3253_v39 }
  0x56   : > { %724 = vmatmul.mubr.bf16.gmra.mrb[20].mxu0 %v3255_v41  ;;  %1109 = vmatmul.mubr.bf16.gmra.mrb[20].mxu1 %v3256_v42 }
  0x57   : > { %731 = vmatprep.mubr.bf16.mxu0 %v3257_v43  ;;  %1116 = vmatprep.mubr.bf16.mxu1 %v3259_v44 }
  0x5e   : > { %732 = vmatmul.mubr.bf16.gmra.mrb[24].mxu0 %v3261_v45  ;;  %1117 = vmatmul.mubr.bf16.gmra.mrb[24].mxu1 %v3262_v46 }
  0x5f   : > { %739 = vmatprep.mubr.bf16.mxu0 %v3263_v47  ;;  %1124 = vmatprep.mubr.bf16.mxu1 %v3265_v48 }
  0x66   : > { %740 = vmatmul.mubr.bf16.gmra.mrb[28].mxu0 %v3267_v49  ;;  %1125 = vmatmul.mubr.bf16.gmra.mrb[28].mxu1 %v3268_v50 }
  0x67   : > { %747 = vmatprep.mubr.bf16.mxu0 %v3269_v51  ;;  %1132 = vmatprep.mubr.bf16.mxu1 %v3271_v52 }
  0x6e   : > { %748 = vmatmul.mubr.bf16.gmra.mrb[32].mxu0 %v3273_v53  ;;  %1133 = vmatmul.mubr.bf16.gmra.mrb[32].mxu1 %v3274_v54 }
  0x6f   : > { %755 = vmatprep.mubr.bf16.mxu0 %v3275_v55  ;;  %1140 = vmatprep.mubr.bf16.mxu1 %v3277_v56 }
  0x76   : > { %756 = vmatmul.mubr.bf16.gmra.mrb[36].mxu0 %v3279_v57  ;;  %1141 = vmatmul.mubr.bf16.gmra.mrb[36].mxu1 %v3280_v58 }
  0x77   : > { %763 = vmatprep.mubr.bf16.mxu0 %v3281_v59  ;;  %1148 = vmatprep.mubr.bf16.mxu1 %v3283_v60 }
  0x7e   : > { %764 = vmatmul.mubr.bf16.gmra.mrb[40].mxu0 %v3285_v61  ;;  %1149 = vmatmul.mubr.bf16.gmra.mrb[40].mxu1 %v3286_v62 }
  0x7f   : > { %771 = vmatprep.mubr.bf16.mxu0 %v3287_v63  ;;  %1156 = vmatprep.mubr.bf16.mxu1 %v3289_v0 }
  0x86   : > { %772 = vmatmul.mubr.bf16.gmra.mrb[44].mxu0 %v3291_v2  ;;  %1157 = vmatmul.mubr.bf16.gmra.mrb[44].mxu1 %v3292_v3 }
  0x87   : > { %779 = vmatprep.mubr.bf16.mxu0 %v3293_v4  ;;  %1164 = vmatprep.mubr.bf16.mxu1 %v3295_v5 }
  0x8e   : > { %780 = vmatmul.mubr.bf16.gmra.mrb[48].mxu0 %v3297_v8  ;;  %1165 = vmatmul.mubr.bf16.gmra.mrb[48].mxu1 %v3298_v9 }
  0x8f   : > { %787 = vmatprep.mubr.bf16.mxu0 %v3299_v10  ;;  %1172 = vmatprep.mubr.bf16.mxu1 %v3301_v11 }
  0x96   : > { %788 = vmatmul.mubr.bf16.gmra.mrb[52].mxu0 %v3303_v14  ;;  %1173 = vmatmul.mubr.bf16.gmra.mrb[52].mxu1 %v3304_v15 }
  0x97   : > { %795 = vmatprep.mubr.bf16.mxu0 %v3305_v16  ;;  %1180 = vmatprep.mubr.bf16.mxu1 %v3307_v17 }
  0x9e   : > { %796 = vmatmul.mubr.bf16.gmra.mrb[56].mxu0 %v3309_v18  ;;  %1181 = vmatmul.mubr.bf16.gmra.mrb[56].mxu1 %v3310_v19 }
  0x9f   : > { %803 = vmatprep.mubr.bf16.mxu0 %v3311_v20  ;;  %1188 = vmatprep.mubr.bf16.mxu1 %v3313_v21 }
  0xa6   : > { %804 = vmatmul.mubr.bf16.gmra.mrb[60].mxu0 %v3315_v22  ;;  %1189 = vmatmul.mubr.bf16.gmra.mrb[60].mxu1 %v3316_v23 }
 0x101   : > { %v2642_v25 = vpop.f32.mrb[0].mxu0  ;;  %v2754_v26 = vpop.f32.mrb[0].mxu1 }
 0x102   : > { %v2643_v27 = vpop.f32.mrb[1].mxu0  ;;  %v2755_v28 = vpop.f32.mrb[1].mxu1 }
 0x103   : > { %v2644_v29 = vadd.f32 %v2643_v27, %v2642_v25  ;;  %v2756_v30 = vadd.f32 %v2755_v28, %v2754_v26  ;;  %v2645_v31 = vpop.f32.mrb[2].mxu0  ;;  %v2757_v32 = vpop.f32.mrb[2].mxu1 }
 0x104   : > { %v2646_v33 = vpop.f32.mrb[3].mxu0  ;;  %v2758_v34 = vpop.f32.mrb[3].mxu1 }
 0x105   : > { %v812_v35 = vmax.f32 %v2644_v29, 0.0  ;;  %v1197_v36 = vmax.f32 %v2756_v30, 0.0  ;;  %v2647_v37 = vadd.f32 %v2646_v33, %v2645_v31  ;;  %v2759_v38 = vadd.f32 %v2758_v34, %v2757_v32 }
 0x107   : > { %v1229_v39 = vsub.f32 %v812_v35, %v1197_v36  ;;  %v813_v40 = vmax.f32 %v2647_v37, 0.0  ;;  %v1198_v41 = vmax.f32 %v2759_v38, 0.0 }
 0x109   : > { %v1230_v42 = vsub.f32 %v813_v40, %v1198_v41  ;;  %v2648_v43 = vpop.f32.mrb[4].mxu0  ;;  %v2760_v44 = vpop.f32.mrb[4].mxu1 }
 0x10a   : > { %v2649_v45 = vpop.f32.mrb[5].mxu0  ;;  %v2761_v46 = vpop.f32.mrb[5].mxu1 }
 0x10b   : > { %v2650_v47 = vadd.f32 %v2649_v45, %v2648_v43  ;;  %v2762_v48 = vadd.f32 %v2761_v46, %v2760_v44  ;;  %v2651_v49 = vpop.f32.mrb[6].mxu0  ;;  %v2763_v50 = vpop.f32.mrb[6].mxu1  ;;  %v1261_v51 = vpack.c.bf16 %v1230_v42, %v1229_v39 }
 0x10c   : > { %v2652_v52 = vpop.f32.mrb[7].mxu0  ;;  %v2764_v53 = vpop.f32.mrb[7].mxu1 }
 0x10d   : > { %v814_v54 = vmax.f32 %v2650_v47, 0.0  ;;  %v1199_v55 = vmax.f32 %v2762_v48, 0.0  ;;  %v2653_v56 = vadd.f32 %v2652_v52, %v2651_v49  ;;  %v2765_v57 = vadd.f32 %v2764_v53, %v2763_v50  ;;  %2972 = vmatprep.mubr.bf16.mxu0 %v1261_v51 }
 0x10f   : > { %v1231_v58 = vsub.f32 %v814_v54, %v1199_v55  ;;  %v815_v59 = vmax.f32 %v2653_v56, 0.0  ;;  %v1200_v60 = vmax.f32 %v2765_v57, 0.0 }
 0x111   : > { %v1232_v61 = vsub.f32 %v815_v59, %v1200_v60  ;;  %v2654_v62 = vpop.f32.mrb[8].mxu0  ;;  %v2766_v63 = vpop.f32.mrb[8].mxu1 }
 0x112   : > { %v2655_v0 = vpop.f32.mrb[9].mxu0  ;;  %v2767_v1 = vpop.f32.mrb[9].mxu1 }
 0x113   : > { %v1262_v2 = vpack.c.bf16 %v1232_v61, %v1231_v58  ;;  %v2656_v3 = vadd.f32 %v2655_v0, %v2654_v62  ;;  %v2768_v4 = vadd.f32 %v2767_v1, %v2766_v63  ;;  %v2657_v5 = vpop.f32.mrb[10].mxu0  ;;  %v2769_v6 = vpop.f32.mrb[10].mxu1 }
 0x114   : > { %v2658_v7 = vpop.f32.mrb[11].mxu0  ;;  %v2770_v8 = vpop.f32.mrb[11].mxu1 }
 0x115   : > { %v816_v9 = vmax.f32 %v2656_v3, 0.0  ;;  %v1201_v10 = vmax.f32 %v2768_v4, 0.0  ;;  %v2659_v11 = vadd.f32 %v2658_v7, %v2657_v5  ;;  %v2771_v12 = vadd.f32 %v2770_v8, %v2769_v6  ;;  %2973 = vmatmul.mubr.bf16.vlgmr.msra.gmra.mrb[64].mxu0 %v1262_v2 }
 0x117   : > { %v1233_v13 = vsub.f32 %v816_v9, %v1201_v10  ;;  %v817_v14 = vmax.f32 %v2659_v11, 0.0  ;;  %v1202_v15 = vmax.f32 %v2771_v12, 0.0 }
 0x119   : > { %v1234_v16 = vsub.f32 %v817_v14, %v1202_v15  ;;  %v2660_v17 = vpop.f32.mrb[12].mxu0  ;;  %v2772_v18 = vpop.f32.mrb[12].mxu1 }
 0x11a   : > { %v2661_v19 = vpop.f32.mrb[13].mxu0  ;;  %v2773_v20 = vpop.f32.mrb[13].mxu1 }
 0x11b   : > { %v2662_v21 = vadd.f32 %v2661_v19, %v2660_v17  ;;  %v2774_v22 = vadd.f32 %v2773_v20, %v2772_v18  ;;  %v2663_v23 = vpop.f32.mrb[14].mxu0  ;;  %v2775_v25 = vpop.f32.mrb[14].mxu1  ;;  %v1263_v26 = vpack.c.bf16 %v1234_v16, %v1233_v13 }
 0x11c   : > { %v2664_v27 = vpop.f32.mrb[15].mxu0  ;;  %v2776_v28 = vpop.f32.mrb[15].mxu1 }
 0x11d   : > { %v818_v29 = vmax.f32 %v2662_v21, 0.0  ;;  %v1203_v30 = vmax.f32 %v2774_v22, 0.0  ;;  %v2665_v31 = vadd.f32 %v2664_v27, %v2663_v23  ;;  %v2777_v32 = vadd.f32 %v2776_v28, %v2775_v25  ;;  %2976 = vmatprep.mubr.bf16.mxu0 %v1263_v26 }
 0x11f   : > { %v1235_v33 = vsub.f32 %v818_v29, %v1203_v30  ;;  %v819_v34 = vmax.f32 %v2665_v31, 0.0  ;;  %v1204_v35 = vmax.f32 %v2777_v32, 0.0 }
 0x121   : > { %v1236_v36 = vsub.f32 %v819_v34, %v1204_v35  ;;  %v2666_v37 = vpop.f32.mrb[16].mxu0  ;;  %v2778_v38 = vpop.f32.mrb[16].mxu1 }
 0x122   : > { %v2667_v39 = vpop.f32.mrb[17].mxu0  ;;  %v2779_v40 = vpop.f32.mrb[17].mxu1 }
 0x123   : > { %v2668_v41 = vadd.f32 %v2667_v39, %v2666_v37  ;;  %v2780_v42 = vadd.f32 %v2779_v40, %v2778_v38  ;;  %v2669_v43 = vpop.f32.mrb[18].mxu0  ;;  %v2781_v44 = vpop.f32.mrb[18].mxu1  ;;  %v1264_v45 = vpack.c.bf16 %v1236_v36, %v1235_v33 }
 0x124   : > { %v2670_v46 = vpop.f32.mrb[19].mxu0  ;;  %v2782_v47 = vpop.f32.mrb[19].mxu1 }
 0x125   : > { %v820_v48 = vmax.f32 %v2668_v41, 0.0  ;;  %v1205_v49 = vmax.f32 %v2780_v42, 0.0  ;;  %v2671_v50 = vadd.f32 %v2670_v46, %v2669_v43  ;;  %v2783_v51 = vadd.f32 %v2782_v47, %v2781_v44  ;;  %2977 = vmatmul.mubr.bf16.gmra.mrb[68].mxu0 %v1264_v45 }
 0x127   : > { %v1237_v52 = vsub.f32 %v820_v48, %v1205_v49  ;;  %v821_v53 = vmax.f32 %v2671_v50, 0.0  ;;  %v1206_v54 = vmax.f32 %v2783_v51, 0.0 }
 0x129   : > { %v1238_v55 = vsub.f32 %v821_v53, %v1206_v54  ;;  %v2672_v56 = vpop.f32.mrb[20].mxu0  ;;  %v2784_v57 = vpop.f32.mrb[20].mxu1 }
 0x12a   : > { %v2673_v58 = vpop.f32.mrb[21].mxu0  ;;  %v2785_v59 = vpop.f32.mrb[21].mxu1 }
 0x12b   : > { %v2674_v60 = vadd.f32 %v2673_v58, %v2672_v56  ;;  %v2786_v61 = vadd.f32 %v2785_v59, %v2784_v57  ;;  %v2675_v62 = vpop.f32.mrb[22].mxu0  ;;  %v2787_v63 = vpop.f32.mrb[22].mxu1  ;;  %v1265_v0 = vpack.c.bf16 %v1238_v55, %v1237_v52 }
 0x12c   : > { %v2676_v1 = vpop.f32.mrb[23].mxu0  ;;  %v2788_v2 = vpop.f32.mrb[23].mxu1 }
 0x12d   : > { %v822_v3 = vmax.f32 %v2674_v60, 0.0  ;;  %v1207_v4 = vmax.f32 %v2786_v61, 0.0  ;;  %v2677_v5 = vadd.f32 %v2676_v1, %v2675_v62  ;;  %v2789_v6 = vadd.f32 %v2788_v2, %v2787_v63  ;;  %2980 = vmatprep.mubr.bf16.mxu0 %v1265_v0 }
 0x12f   : > { %v1239_v7 = vsub.f32 %v822_v3, %v1207_v4  ;;  %v823_v8 = vmax.f32 %v2677_v5, 0.0  ;;  %v1208_v9 = vmax.f32 %v2789_v6, 0.0 }
 0x131   : > { %v1240_v10 = vsub.f32 %v823_v8, %v1208_v9  ;;  %v2678_v11 = vpop.f32.mrb[24].mxu0  ;;  %v2790_v12 = vpop.f32.mrb[24].mxu1 }
 0x132   : > { %v2679_v13 = vpop.f32.mrb[25].mxu0  ;;  %v2791_v14 = vpop.f32.mrb[25].mxu1 }
 0x133   : > { %v2680_v15 = vadd.f32 %v2679_v13, %v2678_v11  ;;  %v2792_v16 = vadd.f32 %v2791_v14, %v2790_v12  ;;  %v2681_v17 = vpop.f32.mrb[26].mxu0  ;;  %v2793_v18 = vpop.f32.mrb[26].mxu1  ;;  %v1266_v19 = vpack.c.bf16 %v1240_v10, %v1239_v7 }
 0x134   : > { %v2682_v20 = vpop.f32.mrb[27].mxu0  ;;  %v2794_v21 = vpop.f32.mrb[27].mxu1 }
 0x135   : > { %v824_v22 = vmax.f32 %v2680_v15, 0.0  ;;  %v1209_v23 = vmax.f32 %v2792_v16, 0.0  ;;  %v2683_v25 = vadd.f32 %v2682_v20, %v2681_v17  ;;  %v2795_v26 = vadd.f32 %v2794_v21, %v2793_v18  ;;  %2981 = vmatmul.mubr.bf16.gmra.mrb[72].mxu0 %v1266_v19 }
 0x137   : > { %v1241_v27 = vsub.f32 %v824_v22, %v1209_v23  ;;  %v825_v28 = vmax.f32 %v2683_v25, 0.0  ;;  %v1210_v29 = vmax.f32 %v2795_v26, 0.0 }
 0x139   : > { %v1242_v30 = vsub.f32 %v825_v28, %v1210_v29  ;;  %v2684_v31 = vpop.f32.mrb[28].mxu0  ;;  %v2796_v32 = vpop.f32.mrb[28].mxu1 }
 0x13a   : > { %v2685_v33 = vpop.f32.mrb[29].mxu0  ;;  %v2797_v34 = vpop.f32.mrb[29].mxu1 }
 0x13b   : > { %v2686_v35 = vadd.f32 %v2685_v33, %v2684_v31  ;;  %v2798_v36 = vadd.f32 %v2797_v34, %v2796_v32  ;;  %v2687_v37 = vpop.f32.mrb[30].mxu0  ;;  %v2799_v38 = vpop.f32.mrb[30].mxu1  ;;  %v1267_v39 = vpack.c.bf16 %v1242_v30, %v1241_v27  ;;  %v3326_v34 = vld [vmem:[%s3965_s5 + $0x8] sm:$0xff]  }
 0x13c   : > { %v2688_v40 = vpop.f32.mrb[31].mxu0  ;;  %v2800_v41 = vpop.f32.mrb[31].mxu1 }
 0x13d   : > { %v826_v42 = vmax.f32 %v2686_v35, 0.0  ;;  %v1211_v43 = vmax.f32 %v2798_v36, 0.0  ;;  %v2689_v44 = vadd.f32 %v2688_v40, %v2687_v37  ;;  %v2801_v45 = vadd.f32 %v2800_v41, %v2799_v38  ;;  %2984 = vmatprep.mubr.bf16.mxu0 %v1267_v39 }
 0x13f   : > { %v1243_v46 = vsub.f32 %v826_v42, %v1211_v43  ;;  %v827_v47 = vmax.f32 %v2689_v44, 0.0  ;;  %v1212_v48 = vmax.f32 %v2801_v45, 0.0  ;;  %v3327_v44 = vld [vmem:[%s3965_s5 + $0x10] sm:$0xff]  }
 0x141   : > { %v1244_v49 = vsub.f32 %v827_v47, %v1212_v48  ;;  %v2690_v50 = vpop.f32.mrb[32].mxu0  ;;  %v2802_v51 = vpop.f32.mrb[32].mxu1 }
 0x142   : > { %v2691_v52 = vpop.f32.mrb[33].mxu0  ;;  %v2803_v53 = vpop.f32.mrb[33].mxu1 }
 0x143   : > { %v2692_v54 = vadd.f32 %v2691_v52, %v2690_v50  ;;  %v2804_v55 = vadd.f32 %v2803_v53, %v2802_v51  ;;  %v2693_v56 = vpop.f32.mrb[34].mxu0  ;;  %v2805_v57 = vpop.f32.mrb[34].mxu1  ;;  %v1268_v58 = vpack.c.bf16 %v1244_v49, %v1243_v46 }
 0x144   : > { %v2694_v59 = vpop.f32.mrb[35].mxu0  ;;  %v2806_v60 = vpop.f32.mrb[35].mxu1 }
 0x145   : > { %v828_v61 = vmax.f32 %v2692_v54, 0.0  ;;  %v1213_v62 = vmax.f32 %v2804_v55, 0.0  ;;  %v2695_v63 = vadd.f32 %v2694_v59, %v2693_v56  ;;  %v2807_v0 = vadd.f32 %v2806_v60, %v2805_v57  ;;  %2985 = vmatmul.mubr.bf16.gmra.mrb[76].mxu0 %v1268_v58 }
 0x147   : > { %v1245_v1 = vsub.f32 %v828_v61, %v1213_v62  ;;  %v829_v2 = vmax.f32 %v2695_v63, 0.0  ;;  %v1214_v3 = vmax.f32 %v2807_v0, 0.0  ;;  %v3329_v0 = vld [vmem:[%s3965_s5 + $0x20] sm:$0xff]  }
 0x149   : > { %v1246_v4 = vsub.f32 %v829_v2, %v1214_v3  ;;  %v2696_v5 = vpop.f32.mrb[36].mxu0  ;;  %v2808_v6 = vpop.f32.mrb[36].mxu1 }
 0x14a   : > { %v2697_v7 = vpop.f32.mrb[37].mxu0  ;;  %v2809_v8 = vpop.f32.mrb[37].mxu1 }
 0x14b   : > { %v2698_v9 = vadd.f32 %v2697_v7, %v2696_v5  ;;  %v2810_v10 = vadd.f32 %v2809_v8, %v2808_v6  ;;  %v2699_v11 = vpop.f32.mrb[38].mxu0  ;;  %v2811_v12 = vpop.f32.mrb[38].mxu1  ;;  %v1269_v13 = vpack.c.bf16 %v1246_v4, %v1245_v1 }
 0x14c   : > { %v2700_v14 = vpop.f32.mrb[39].mxu0  ;;  %v2812_v15 = vpop.f32.mrb[39].mxu1 }
 0x14d   : > { %v830_v16 = vmax.f32 %v2698_v9, 0.0  ;;  %v1215_v17 = vmax.f32 %v2810_v10, 0.0  ;;  %v2701_v18 = vadd.f32 %v2700_v14, %v2699_v11  ;;  %v2813_v19 = vadd.f32 %v2812_v15, %v2811_v12  ;;  %2988 = vmatprep.mubr.bf16.mxu1 %v1269_v13  ;;  %v3330_v11 = vld [vmem:[%s3965_s5 + $0x28] sm:$0xff]  }
 0x14f   : > { %v1247_v20 = vsub.f32 %v830_v16, %v1215_v17  ;;  %v831_v21 = vmax.f32 %v2701_v18, 0.0  ;;  %v1216_v22 = vmax.f32 %v2813_v19, 0.0 }
 0x151   : > { %v1248_v23 = vsub.f32 %v831_v21, %v1216_v22  ;;  %v2702_v25 = vpop.f32.mrb[40].mxu0  ;;  %v2814_v26 = vpop.f32.mrb[40].mxu1  ;;  %v3331_v21 = vld [vmem:[%s3965_s5 + $0x30] sm:$0xff]  }
 0x152   : > { %v2703_v27 = vpop.f32.mrb[41].mxu0  ;;  %v2815_v28 = vpop.f32.mrb[41].mxu1 }
 0x153   : > { %v1270_v29 = vpack.c.bf16 %v1248_v23, %v1247_v20  ;;  %v2704_v30 = vadd.f32 %v2703_v27, %v2702_v25  ;;  %v2816_v31 = vadd.f32 %v2815_v28, %v2814_v26  ;;  %v2705_v32 = vpop.f32.mrb[42].mxu0  ;;  %v2817_v33 = vpop.f32.mrb[42].mxu1 }
 0x154   : > { %v2706_v35 = vpop.f32.mrb[43].mxu0  ;;  %v2818_v36 = vpop.f32.mrb[43].mxu1 }
 0x155   : > { %v832_v37 = vmax.f32 %v2704_v30, 0.0  ;;  %v1217_v38 = vmax.f32 %v2816_v31, 0.0  ;;  %v2707_v39 = vadd.f32 %v2706_v35, %v2705_v32  ;;  %v2819_v40 = vadd.f32 %v2818_v36, %v2817_v33  ;;  %2989 = vmatmul.mubr.bf16.vlgmr.msra.gmra.mrb[64].mxu1 %v1270_v29  ;;  %v3332_v33 = vld [vmem:[%s3965_s5 + $0x38] sm:$0xff]  }
 0x156   : > { %3005 = vmatpush3.bf16.msra.mxu1 %v3665_v24  ;;  %v3328_v24 = vld [vmem:[%s3965_s5 + $0x18] sm:$0xff]  }
 0x157   : > { %v1249_v41 = vsub.f32 %v832_v37, %v1217_v38  ;;  %v833_v42 = vmax.f32 %v2707_v39, 0.0  ;;  %v1218_v43 = vmax.f32 %v2819_v40, 0.0  ;;  %3006 = vmatprep.subr.bf16.mxu1 %v3326_v34 }
 0x159   : > { %v1250_v45 = vsub.f32 %v833_v42, %v1218_v43  ;;  %v2708_v46 = vpop.f32.mrb[44].mxu0  ;;  %v2820_v47 = vpop.f32.mrb[44].mxu1 }
 0x15a   : > { %v2709_v48 = vpop.f32.mrb[45].mxu0  ;;  %v2821_v49 = vpop.f32.mrb[45].mxu1  ;;  %3007 = vmatpush3.bf16.msra.mxu1 %v3326_v34 }
 0x15b   : > { %v2710_v50 = vadd.f32 %v2709_v48, %v2708_v46  ;;  %v2822_v51 = vadd.f32 %v2821_v49, %v2820_v47  ;;  %v2711_v52 = vpop.f32.mrb[46].mxu0  ;;  %v2823_v53 = vpop.f32.mrb[46].mxu1  ;;  %v1271_v54 = vpack.c.bf16 %v1250_v45, %v1249_v41  ;;  %3008 = vmatprep.subr.bf16.mxu1 %v3327_v44 }
 0x15c   : > { %v2712_v55 = vpop.f32.mrb[47].mxu0  ;;  %v2824_v56 = vpop.f32.mrb[47].mxu1 }
 0x15d   : > { %v834_v57 = vmax.f32 %v2710_v50, 0.0  ;;  %v1219_v58 = vmax.f32 %v2822_v51, 0.0  ;;  %v2713_v59 = vadd.f32 %v2712_v55, %v2711_v52  ;;  %v2825_v60 = vadd.f32 %v2824_v56, %v2823_v53  ;;  %2992 = vmatprep.mubr.bf16.mxu1 %v1271_v54 }
 0x15e   : > { %3009 = vmatpush3.bf16.msra.mxu1 %v3327_v44 }
 0x15f   : > { %v1251_v61 = vsub.f32 %v834_v57, %v1219_v58  ;;  %v835_v62 = vmax.f32 %v2713_v59, 0.0  ;;  %v1220_v63 = vmax.f32 %v2825_v60, 0.0  ;;  %3010 = vmatprep.subr.bf16.mxu1 %v3328_v24 }
 0x161   : > { %v1252_v1 = vsub.f32 %v835_v62, %v1220_v63  ;;  %v2714_v2 = vpop.f32.mrb[48].mxu0  ;;  %v2826_v3 = vpop.f32.mrb[48].mxu1 }
 0x162   : > { %v2715_v4 = vpop.f32.mrb[49].mxu0  ;;  %v2827_v5 = vpop.f32.mrb[49].mxu1  ;;  %3011 = vmatpush3.bf16.msra.mxu1 %v3328_v24 }
 0x163   : > { %v2716_v6 = vadd.f32 %v2715_v4, %v2714_v2  ;;  %v2828_v7 = vadd.f32 %v2827_v5, %v2826_v3  ;;  %v2717_v8 = vpop.f32.mrb[50].mxu0  ;;  %v2829_v9 = vpop.f32.mrb[50].mxu1  ;;  %v1272_v10 = vpack.c.bf16 %v1252_v1, %v1251_v61  ;;  %3012 = vmatprep.subr.bf16.mxu1 %v3329_v0 }
 0x164   : > { %v2718_v12 = vpop.f32.mrb[51].mxu0  ;;  %v2830_v13 = vpop.f32.mrb[51].mxu1 }
 0x165   : > { %v836_v14 = vmax.f32 %v2716_v6, 0.0  ;;  %v1221_v15 = vmax.f32 %v2828_v7, 0.0  ;;  %v2719_v16 = vadd.f32 %v2718_v12, %v2717_v8  ;;  %v2831_v17 = vadd.f32 %v2830_v13, %v2829_v9  ;;  %2993 = vmatmul.mubr.bf16.gmra.mrb[68].mxu1 %v1272_v10 }
 0x166   : > { %3013 = vmatpush3.bf16.msra.mxu1 %v3329_v0 }
 0x167   : > { %v1253_v18 = vsub.f32 %v836_v14, %v1221_v15  ;;  %v837_v19 = vmax.f32 %v2719_v16, 0.0  ;;  %v1222_v20 = vmax.f32 %v2831_v17, 0.0  ;;  %3014 = vmatprep.subr.bf16.mxu1 %v3330_v11  ;;  %v3333_v17 = vld [vmem:[%s3672_s29] sm:$0xff]  }
 0x169   : > { %v1254_v22 = vsub.f32 %v837_v19, %v1222_v20  ;;  %v2720_v23 = vpop.f32.mrb[52].mxu0  ;;  %v2832_v25 = vpop.f32.mrb[52].mxu1  ;;  %v3334_v19 = vld [vmem:[%s3672_s29 + $0x8] sm:$0xff]   ;;  %v3335_v20 = vld [vmem:[%s3672_s29 + $0x10] sm:$0xff]  }
 0x16a   : > { %v2721_v26 = vpop.f32.mrb[53].mxu0  ;;  %v2833_v27 = vpop.f32.mrb[53].mxu1  ;;  %3015 = vmatpush3.bf16.msra.mxu1 %v3330_v11 }
 0x16b   : > { %v2722_v28 = vadd.f32 %v2721_v26, %v2720_v23  ;;  %v2834_v29 = vadd.f32 %v2833_v27, %v2832_v25  ;;  %v2723_v30 = vpop.f32.mrb[54].mxu0  ;;  %v2835_v31 = vpop.f32.mrb[54].mxu1  ;;  %v1273_v32 = vpack.c.bf16 %v1254_v22, %v1253_v18  ;;  %3016 = vmatprep.subr.bf16.mxu1 %v3331_v21  ;;  %v3337_v22 = vld [vmem:[%s3672_s29 + $0x20] sm:$0xff]   ;;  %v3338_v23 = vld [vmem:[%s3672_s29 + $0x28] sm:$0xff]   ;;  %v3339_v25 = vld [vmem:[%s3672_s29 + $0x30] sm:$0xff]  }
 0x16c   : > { %v2724_v34 = vpop.f32.mrb[55].mxu0  ;;  %v2836_v35 = vpop.f32.mrb[55].mxu1  ;;  %v3340_v26 = vld [vmem:[%s3672_s29 + $0x38] sm:$0xff]   ;;  %v3341_v27 = vld [vmem:[%s3672_s29 + $0x40] sm:$0xff]  }
 0x16d   : > { %v838_v36 = vmax.f32 %v2722_v28, 0.0  ;;  %v1223_v37 = vmax.f32 %v2834_v29, 0.0  ;;  %v2725_v38 = vadd.f32 %v2724_v34, %v2723_v30  ;;  %v2837_v39 = vadd.f32 %v2836_v35, %v2835_v31  ;;  %2996 = vmatprep.mubr.bf16.mxu1 %v1273_v32  ;;  %v3342_v28 = vld [vmem:[%s3672_s29 + $0x48] sm:$0xff]   ;;  %v3343_v29 = vld [vmem:[%s3672_s29 + $0x50] sm:$0xff]   ;;  %v3344_v30 = vld [vmem:[%s3672_s29 + $0x58] sm:$0xff]  }
 0x16e   : > { %3017 = vmatpush3.bf16.msra.mxu1 %v3331_v21  ;;  %v3336_v21 = vld [vmem:[%s3672_s29 + $0x18] sm:$0xff]   ;;  %v3345_v31 = vld [vmem:[%s3672_s29 + $0x60] sm:$0xff]   ;;  %v3346_v32 = vld [vmem:[%s3672_s29 + $0x68] sm:$0xff]  }
 0x16f   : > { %v1255_v40 = vsub.f32 %v838_v36, %v1223_v37  ;;  %v839_v41 = vmax.f32 %v2725_v38, 0.0  ;;  %v1224_v42 = vmax.f32 %v2837_v39, 0.0  ;;  %3018 = vmatprep.subr.bf16.mxu1 %v3332_v33  ;;  %v3348_v34 = vld [vmem:[%s3672_s29 + $0x78] sm:$0xff]   ;;  %v3349_v35 = vld [vmem:[%s3966_s6] sm:$0xff]   ;;  %v3350_v36 = vld [vmem:[%s3966_s6 + $0x8] sm:$0xff]  }
 0x170   : > { %3052 = vmatprep.subr.bf16.mxu0 %v3349_v35  ;;  %v3351_v37 = vld [vmem:[%s3966_s6 + $0x10] sm:$0xff]   ;;  %v3352_v38 = vld [vmem:[%s3966_s6 + $0x18] sm:$0xff]   ;;  %v3353_v39 = vld [vmem:[%s3966_s6 + $0x20] sm:$0xff]  }
 0x171   : > { %v1256_v43 = vsub.f32 %v839_v41, %v1224_v42  ;;  %v2726_v44 = vpop.f32.mrb[56].mxu0  ;;  %v2838_v45 = vpop.f32.mrb[56].mxu1  ;;  %3053 = vmatpush3.bf16.msra.mxu0 %v3349_v35  ;;  %v3355_v41 = vld [vmem:[%s3966_s6 + $0x30] sm:$0xff]   ;;  %v3356_v42 = vld [vmem:[%s3966_s6 + $0x38] sm:$0xff]  }
 0x172   : > { %v2727_v46 = vpop.f32.mrb[57].mxu0  ;;  %v2839_v47 = vpop.f32.mrb[57].mxu1  ;;  %3019 = vmatpush3.bf16.msra.mxu1 %v3332_v33  ;;  %v3347_v33 = vld [vmem:[%s3672_s29 + $0x70] sm:$0xff]   ;;  %3054 = vmatprep.subr.bf16.mxu0 %v3350_v36 }
 0x173   : > { %v2728_v48 = vadd.f32 %v2727_v46, %v2726_v44  ;;  %v2840_v49 = vadd.f32 %v2839_v47, %v2838_v45  ;;  %v2729_v50 = vpop.f32.mrb[58].mxu0  ;;  %v2841_v51 = vpop.f32.mrb[58].mxu1  ;;  %v1274_v52 = vpack.c.bf16 %v1256_v43, %v1255_v40  ;;  %v3354_v40 = vld [vmem:[%s3966_s6 + $0x28] sm:$0xff]  }
 0x174   : > { %v2730_v53 = vpop.f32.mrb[59].mxu0  ;;  %v2842_v54 = vpop.f32.mrb[59].mxu1 }
 0x175   : > { %v840_v24 = vmax.f32 %v2728_v48, 0.0  ;;  %v1225_v55 = vmax.f32 %v2840_v49, 0.0  ;;  %v2731_v56 = vadd.f32 %v2730_v53, %v2729_v50  ;;  %v2843_v57 = vadd.f32 %v2842_v54, %v2841_v51  ;;  %2997 = vmatmul.mubr.bf16.gmra.mrb[72].mxu1 %v1274_v52  ;;  %3055 = vmatpush3.bf16.msra.mxu0 %v3350_v36 }
 0x176   : > { %3056 = vmatprep.subr.bf16.mxu0 %v3351_v37 }
 0x177   : > { %v1257_v58 = vsub.f32 %v840_v24, %v1225_v55  ;;  %v841_v59 = vmax.f32 %v2731_v56, 0.0  ;;  %v1226_v60 = vmax.f32 %v2843_v57, 0.0 }
 0x179   : > { %v1258_v61 = vsub.f32 %v841_v59, %v1226_v60  ;;  %v2732_v62 = vpop.f32.mrb[60].mxu0  ;;  %v2844_v63 = vpop.f32.mrb[60].mxu1  ;;  %3057 = vmatpush3.bf16.msra.mxu0 %v3351_v37 }
 0x17a   : > { %v2733_v0 = vpop.f32.mrb[61].mxu0  ;;  %v2845_v1 = vpop.f32.mrb[61].mxu1  ;;  %3058 = vmatprep.subr.bf16.mxu0 %v3352_v38 }
 0x17b   : > { %v2734_v2 = vadd.f32 %v2733_v0, %v2732_v62  ;;  %v2846_v3 = vadd.f32 %v2845_v1, %v2844_v63  ;;  %v2735_v4 = vpop.f32.mrb[62].mxu0  ;;  %v2847_v5 = vpop.f32.mrb[62].mxu1  ;;  %v1275_v6 = vpack.c.bf16 %v1258_v61, %v1257_v58 }
 0x17c   : > { %v2736_v7 = vpop.f32.mrb[63].mxu0  ;;  %v2848_v8 = vpop.f32.mrb[63].mxu1 }
 0x17d   : > { %v842_v9 = vmax.f32 %v2734_v2, 0.0  ;;  %v1227_v10 = vmax.f32 %v2846_v3, 0.0  ;;  %v2737_v11 = vadd.f32 %v2736_v7, %v2735_v4  ;;  %v2849_v12 = vadd.f32 %v2848_v8, %v2847_v5  ;;  %3000 = vmatprep.mubr.bf16.mxu1 %v1275_v6  ;;  %3059 = vmatpush3.bf16.msra.mxu0 %v3352_v38 }
 0x17e   : > { %3060 = vmatprep.subr.bf16.mxu0 %v3353_v39 }
 0x17f   : > { %v1259_v13 = vsub.f32 %v842_v9, %v1227_v10  ;;  %v843_v14 = vmax.f32 %v2737_v11, 0.0  ;;  %v1228_v15 = vmax.f32 %v2849_v12, 0.0 }
 0x181   : > { %v1260_v16 = vsub.f32 %v843_v14, %v1228_v15  ;;  %3061 = vmatpush3.bf16.msra.mxu0 %v3353_v39 }
 0x182   : > { %3062 = vmatprep.subr.bf16.mxu0 %v3354_v40 }
 0x183   : > { %v1276_v18 = vpack.c.bf16 %v1260_v16, %v1259_v13 }
 0x185   : > { %3001 = vmatmul.mubr.bf16.gmra.mrb[76].mxu1 %v1276_v18  ;;  %3063 = vmatpush3.bf16.msra.mxu0 %v3354_v40 }
 0x186   : > { %3020 = vmatprep.mubr.bf16.mxu1 %v3333_v17  ;;  %3064 = vmatprep.subr.bf16.mxu0 %v3355_v41 }
 0x189   : > { %3065 = vmatpush3.bf16.msra.mxu0 %v3355_v41 }
 0x18a   : > { %3066 = vmatprep.subr.bf16.mxu0 %v3356_v42 }
 0x18d   : > { %3021 = vmatmul.mubr.bf16.vlgmr.msra.gmra.mrb[80].mxu1 %v3334_v19  ;;  %3067 = vmatpush3.bf16.msra.mxu0 %v3356_v42 }
 0x18e   : > { %3024 = vmatprep.mubr.bf16.mxu1 %v3335_v20 }
 0x195   : > { %3025 = vmatmul.mubr.bf16.gmra.mrb[84].mxu1 %v3336_v21 }
 0x196   : > { %3028 = vmatprep.mubr.bf16.mxu1 %v3337_v22 }
 0x19d   : > { %3029 = vmatmul.mubr.bf16.gmra.mrb[88].mxu1 %v3338_v23 }
 0x19e   : > { %3032 = vmatprep.mubr.bf16.mxu1 %v3339_v25 }
 0x1a5   : > { %3033 = vmatmul.mubr.bf16.gmra.mrb[92].mxu1 %v3340_v26 }
 0x1a6   : > { %3036 = vmatprep.mubr.bf16.mxu1 %v3341_v27 }
 0x1ad   : > { %3037 = vmatmul.mubr.bf16.gmra.mrb[96].mxu1 %v3342_v28 }
 0x1ae   : > { %3040 = vmatprep.mubr.bf16.mxu1 %v3343_v29 }
 0x1b5   : > { %3041 = vmatmul.mubr.bf16.gmra.mrb[100].mxu1 %v3344_v30 }
 0x1b6   : > { %3044 = vmatprep.mubr.bf16.mxu1 %v3345_v31 }
 0x1bd   : > { %3045 = vmatmul.mubr.bf16.gmra.mrb[104].mxu1 %v3346_v32 }
 0x1be   : > { %3048 = vmatprep.mubr.bf16.mxu1 %v3347_v33 }
 0x1c5   : > { %3049 = vmatmul.mubr.bf16.gmra.mrb[108].mxu1 %v3348_v34 }
 0x1e8   : > { %v3736_v43 = vpop.f32.mrb[64].mxu0 }
 0x1e9   : > { %v3738_v44 = vpop.f32.mrb[65].mxu0 }
 0x1ea   : > { %v3740_v45 = vpop.f32.mrb[66].mxu0 }
 0x1eb   : > { %v3742_v46 = vpop.f32.mrb[67].mxu0 }
 0x1f8   : > { %v3744_v47 = vpop.f32.mrb[68].mxu0 }
 0x1f9   : > { %v3746_v48 = vpop.f32.mrb[69].mxu0 }
 0x1fa   : > { %v3748_v49 = vpop.f32.mrb[70].mxu0 }
 0x1fb   : > { %v3750_v50 = vpop.f32.mrb[71].mxu0 }
 0x208   : > { %v3752_v51 = vpop.f32.mrb[72].mxu0 }
 0x209   : > { %v3754_v52 = vpop.f32.mrb[73].mxu0 }
 0x20a   : > { %v3756_v53 = vpop.f32.mrb[74].mxu0 }
 0x20b   : > { %v3758_v54 = vpop.f32.mrb[75].mxu0 }
 0x218   : > { %v3760_v24 = vpop.f32.mrb[76].mxu0 }
 0x219   : > { %v3762_v55 = vpop.f32.mrb[77].mxu0 }
 0x21a   : > { %v3764_v56 = vpop.f32.mrb[78].mxu0 }
 0x21b   : > { %v3766_v57 = vpop.f32.mrb[79].mxu0 }
 0x228   : > { %v3768_v58 = vpop.f32.mrb[64].mxu1 }
 0x229   : > { %v3770_v59 = vpop.f32.mrb[65].mxu1 }
 0x22a   : > { %v3772_v60 = vpop.f32.mrb[66].mxu1 }
 0x22b   : > { %v3774_v61 = vpop.f32.mrb[67].mxu1 }
 0x238   : > { %v3776_v62 = vpop.f32.mrb[68].mxu1 }
 0x239   : > { %v3778_v63 = vpop.f32.mrb[69].mxu1 }
 0x23a   : > { %v3780_v0 = vpop.f32.mrb[70].mxu1 }
 0x23b   : > { %v3782_v1 = vpop.f32.mrb[71].mxu1 }
 0x248   : > { %v3784_v2 = vpop.f32.mrb[72].mxu1 }
 0x249   : > { %v3786_v3 = vpop.f32.mrb[73].mxu1 }
 0x24a   : > { %v3788_v4 = vpop.f32.mrb[74].mxu1 }
 0x24b   : > { %v3790_v5 = vpop.f32.mrb[75].mxu1 }
 0x258   : > { %v3792_v6 = vpop.f32.mrb[76].mxu1 }
 0x259   : > { %v3794_v7 = vpop.f32.mrb[77].mxu1 }
 0x25a   : > { %v3796_v8 = vpop.f32.mrb[78].mxu1 }
 0x25b   : > { %v3798_v9 = vpop.f32.mrb[79].mxu1 }
 0x260   : > { %v3022_v10 = vpop.f32.mrb[80].mxu1 }
 0x261   : > { %v1728_v11 = vpop.f32.mrb[81].mxu1  ;;  %v1857_v13 = vmax.f32 %v3022_v10, 0.0 }
 0x262   : > { %v3023_v12 = vpop.f32.mrb[82].mxu1  ;;  %v1855_v16 = vmax.f32 %v1728_v11, 0.0 }
 0x263   : > { %v1858_v14 = vmax.f32 %v3023_v12, 0.0  ;;  %v1731_v15 = vpop.f32.mrb[83].mxu1 }
 0x264   : > { %v1856_v17 = vmax.f32 %v1731_v15, 0.0 }
 0x265   : > { %v1888_v18 = vpack.c.bf16 %v1858_v14, %v1857_v13 }
 0x266   : > { %v1887_v19 = vpack.c.bf16 %v1856_v17, %v1855_v16 }
 0x268   : > { %v3026_v20 = vpop.f32.mrb[84].mxu1  ;;  %3068 = vmatprep.mubr.bf16.mxu0 %v1887_v19 }
 0x269   : > { %v1744_v21 = vpop.f32.mrb[85].mxu1  ;;  %3069 = vmatmul.mubr.bf16.vlgmr.msra.gmra.mrb[80].mxu0 %v1888_v18  ;;  %v1861_v23 = vmax.f32 %v3026_v20, 0.0 }
 0x26a   : > { %v3027_v22 = vpop.f32.mrb[86].mxu1  ;;  %v1859_v27 = vmax.f32 %v1744_v21, 0.0 }
 0x26b   : > { %v1862_v25 = vmax.f32 %v3027_v22, 0.0  ;;  %v1747_v26 = vpop.f32.mrb[87].mxu1 }
 0x26c   : > { %v1860_v28 = vmax.f32 %v1747_v26, 0.0 }
 0x26d   : > { %v1890_v29 = vpack.c.bf16 %v1862_v25, %v1861_v23 }
 0x26e   : > { %v1889_v30 = vpack.c.bf16 %v1860_v28, %v1859_v27 }
 0x270   : > { %v3030_v31 = vpop.f32.mrb[88].mxu1  ;;  %3072 = vmatprep.mubr.bf16.mxu0 %v1889_v30 }
 0x271   : > { %v1760_v32 = vpop.f32.mrb[89].mxu1  ;;  %3073 = vmatmul.mubr.bf16.gmra.mrb[84].mxu0 %v1890_v29  ;;  %v1865_v34 = vmax.f32 %v3030_v31, 0.0 }
 0x272   : > { %v3031_v33 = vpop.f32.mrb[90].mxu1  ;;  %v1863_v37 = vmax.f32 %v1760_v32, 0.0 }
 0x273   : > { %v1866_v35 = vmax.f32 %v3031_v33, 0.0  ;;  %v1763_v36 = vpop.f32.mrb[91].mxu1 }
 0x274   : > { %v1864_v38 = vmax.f32 %v1763_v36, 0.0 }
 0x275   : > { %v1892_v39 = vpack.c.bf16 %v1866_v35, %v1865_v34 }
 0x276   : > { %v1891_v40 = vpack.c.bf16 %v1864_v38, %v1863_v37 }
 0x278   : > { %v3034_v41 = vpop.f32.mrb[92].mxu1  ;;  %3076 = vmatprep.mubr.bf16.mxu0 %v1891_v40 }
 0x279   : > { %v1776_v42 = vpop.f32.mrb[93].mxu1  ;;  %3077 = vmatmul.mubr.bf16.gmra.mrb[88].mxu0 %v1892_v39  ;;  %v1869_v11 = vmax.f32 %v3034_v41, 0.0 }
 0x27a   : > { %v3035_v10 = vpop.f32.mrb[94].mxu1  ;;  %v1867_v14 = vmax.f32 %v1776_v42, 0.0 }
 0x27b   : > { %v1870_v12 = vmax.f32 %v3035_v10, 0.0  ;;  %v1779_v13 = vpop.f32.mrb[95].mxu1 }
 0x27c   : > { %v1868_v15 = vmax.f32 %v1779_v13, 0.0 }
 0x27d   : > { %v1894_v16 = vpack.c.bf16 %v1870_v12, %v1869_v11 }
 0x27e   : > { %v1893_v17 = vpack.c.bf16 %v1868_v15, %v1867_v14 }
 0x280   : > { %v3038_v18 = vpop.f32.mrb[96].mxu1  ;;  %3080 = vmatprep.mubr.bf16.mxu0 %v1893_v17 }
 0x281   : > { %v1792_v19 = vpop.f32.mrb[97].mxu1  ;;  %3081 = vmatmul.mubr.bf16.gmra.mrb[92].mxu0 %v1894_v16  ;;  %v1873_v21 = vmax.f32 %v3038_v18, 0.0 }
 0x282   : > { %v3039_v20 = vpop.f32.mrb[98].mxu1  ;;  %v1871_v25 = vmax.f32 %v1792_v19, 0.0 }
 0x283   : > { %v1874_v22 = vmax.f32 %v3039_v20, 0.0  ;;  %v1795_v23 = vpop.f32.mrb[99].mxu1 }
 0x284   : > { %v1872_v26 = vmax.f32 %v1795_v23, 0.0 }
 0x285   : > { %v1896_v27 = vpack.c.bf16 %v1874_v22, %v1873_v21 }
 0x286   : > { %v1895_v28 = vpack.c.bf16 %v1872_v26, %v1871_v25 }
 0x288   : > { %v3042_v29 = vpop.f32.mrb[100].mxu1  ;;  %3084 = vmatprep.mubr.bf16.mxu0 %v1895_v28 }
 0x289   : > { %v1877_v30 = vmax.f32 %v3042_v29, 0.0  ;;  %v1808_v31 = vpop.f32.mrb[101].mxu1  ;;  %3085 = vmatmul.mubr.bf16.gmra.mrb[96].mxu0 %v1896_v27  ;;  %v3421_v27 = vmov 1.0  }
 0x28a   : > { %v1875_v32 = vmax.f32 %v1808_v31, 0.0  ;;  %v3043_v33 = vpop.f32.mrb[102].mxu1  ;;  %2954 = vmatprep.mubr.msk.f32.mxu1 %vm2160_vm0, %v3421_v27 }
 0x28b   : > { %v1878_v34 = vmax.f32 %v3043_v33, 0.0  ;;  %v1811_v35 = vpop.f32.mrb[103].mxu1 }
 0x28c   : > { %v1876_v36 = vmax.f32 %v1811_v35, 0.0 }
 0x28d   : > { %v1898_v37 = vpack.c.bf16 %v1878_v34, %v1877_v30 }
 0x28e   : > { %v1897_v38 = vpack.c.bf16 %v1876_v36, %v1875_v32 }
 0x290   : > { %v3046_v39 = vpop.f32.mrb[104].mxu1  ;;  %3088 = vmatprep.mubr.bf16.mxu0 %v1897_v38 }
 0x291   : > { %v1881_v40 = vmax.f32 %v3046_v39, 0.0  ;;  %v1824_v41 = vpop.f32.mrb[105].mxu1  ;;  %3089 = vmatmul.mubr.bf16.gmra.mrb[100].mxu0 %v1898_v37 }
 0x292   : > { %v1879_v42 = vmax.f32 %v1824_v41, 0.0  ;;  %v3047_v10 = vpop.f32.mrb[106].mxu1 }
 0x293   : > { %v1882_v11 = vmax.f32 %v3047_v10, 0.0  ;;  %v1827_v12 = vpop.f32.mrb[107].mxu1 }
 0x294   : > { %v1880_v13 = vmax.f32 %v1827_v12, 0.0 }
 0x295   : > { %v1900_v14 = vpack.c.bf16 %v1882_v11, %v1881_v40 }
 0x296   : > { %v1899_v15 = vpack.c.bf16 %v1880_v13, %v1879_v42 }
 0x298   : > { %v3050_v16 = vpop.f32.mrb[108].mxu1  ;;  %3092 = vmatprep.mubr.bf16.mxu0 %v1899_v15 }
 0x299   : > { %v1885_v17 = vmax.f32 %v3050_v16, 0.0  ;;  %v1840_v18 = vpop.f32.mrb[109].mxu1  ;;  %3093 = vmatmul.mubr.bf16.gmra.mrb[104].mxu0 %v1900_v14 }
 0x29a   : > { %v1883_v19 = vmax.f32 %v1840_v18, 0.0  ;;  %v3051_v20 = vpop.f32.mrb[110].mxu1 }
 0x29b   : > { %v1886_v21 = vmax.f32 %v3051_v20, 0.0  ;;  %v1843_v22 = vpop.f32.mrb[111].mxu1 }
 0x29c   : > { %v1884_v23 = vmax.f32 %v1843_v22, 0.0 }
 0x29d   : > { %v1902_v25 = vpack.c.bf16 %v1886_v21, %v1885_v17 }
 0x29e   : > { %v1901_v26 = vpack.c.bf16 %v1884_v23, %v1883_v19 }
 0x2a0   : > { %3096 = vmatprep.mubr.bf16.mxu0 %v1901_v26 }
 0x2a1   : > { %3097 = vmatmul.mubr.bf16.gmra.mrb[108].mxu0 %v1902_v25 }
 0x33c   : > { %v3070_v28 = vpop.f32.mrb[80].mxu0 }
 0x33d   : > { %v3803_v29 = vmul.f32 %v3070_v28, %v3736_v43  ;;  %v2001_v30 = vpop.f32.mrb[81].mxu0 }
 0x33e   : > { %v2128_v31 = vmul.f32 %v2001_v30, %v3738_v44  ;;  %v3071_v32 = vpop.f32.mrb[82].mxu0 }
 0x33f   : > { %v3807_v33 = vmul.f32 %v3071_v32, %v3740_v45  ;;  %v2004_v34 = vpop.f32.mrb[83].mxu0 }
 0x340   : > { %v2129_v35 = vmul.f32 %v2004_v34, %v3742_v46 }
 0x341   : > { %v3109_v36 = vpack.c.bf16 %v3807_v33, %v3803_v29 }
 0x342   : > { %v3103_v37 = vpack.c.bf16 %v2129_v35, %v2128_v31 }
 0x344   : > { %v3074_v38 = vpop.f32.mrb[84].mxu0 }
 0x345   : > { %v3813_v39 = vmul.f32 %v3074_v38, %v3744_v47  ;;  %v2017_v43 = vpop.f32.mrb[85].mxu0 }
 0x346   : > { %v3816_v40 = vmul.f32 %v2017_v43, %v3746_v48  ;;  %v3075_v44 = vpop.f32.mrb[86].mxu0 }
 0x347   : > { %v3819_v41 = vmul.f32 %v3075_v44, %v3748_v49  ;;  %v2020_v45 = vpop.f32.mrb[87].mxu0 }
 0x348   : > { %v3822_v42 = vmul.f32 %v2020_v45, %v3750_v50 }
 0x349   : > { %v3121_v46 = vpack.c.bf16 %v3819_v41, %v3813_v39 }
 0x34a   : > { %v3115_v10 = vpack.c.bf16 %v3822_v42, %v3816_v40 }
 0x34c   : > { %v3078_v47 = vpop.f32.mrb[88].mxu0 }
 0x34d   : > { %v3829_v11 = vmul.f32 %v3078_v47, %v3752_v51  ;;  %v2033_v48 = vpop.f32.mrb[89].mxu0 }
 0x34e   : > { %v3832_v12 = vmul.f32 %v2033_v48, %v3754_v52  ;;  %v3079_v49 = vpop.f32.mrb[90].mxu0 }
 0x34f   : > { %v3835_v13 = vmul.f32 %v3079_v49, %v3756_v53  ;;  %v2036_v50 = vpop.f32.mrb[91].mxu0 }
 0x350   : > { %v3838_v14 = vmul.f32 %v2036_v50, %v3758_v54 }
 0x351   : > { %v3133_v15 = vpack.c.bf16 %v3835_v13, %v3829_v11 }
 0x352   : > { %v3127_v16 = vpack.c.bf16 %v3838_v14, %v3832_v12 }
 0x354   : > { %v3082_v51 = vpop.f32.mrb[92].mxu0 }
 0x355   : > { %v3845_v17 = vmul.f32 %v3082_v51, %v3760_v24  ;;  %v2049_v52 = vpop.f32.mrb[93].mxu0 }
 0x356   : > { %v2140_v18 = vmul.f32 %v2049_v52, %v3762_v55  ;;  %v3083_v19 = vpop.f32.mrb[94].mxu0 }
 0x357   : > { %v2143_v53 = vmul.f32 %v3083_v19, %v3764_v56  ;;  %v2052_v20 = vpop.f32.mrb[95].mxu0 }
 0x358   : > { %v2141_v54 = vmul.f32 %v2052_v20, %v3766_v57 }
 0x359   : > { %v3145_v21 = vpack.c.bf16 %v2143_v53, %v3845_v17 }
 0x35a   : > { %v3139_v22 = vpack.c.bf16 %v2141_v54, %v2140_v18 }
 0x35c   : > { %v3086_v23 = vpop.f32.mrb[96].mxu0 }
 0x35d   : > { %v2146_v25 = vmul.f32 %v3086_v23, %v3768_v58  ;;  %v2065_v26 = vpop.f32.mrb[97].mxu0 }
 0x35e   : > { %v2144_v28 = vmul.f32 %v2065_v26, %v3770_v59  ;;  %v3087_v24 = vpop.f32.mrb[98].mxu0 }
 0x35f   : > { %v2147_v29 = vmul.f32 %v3087_v24, %v3772_v60  ;;  %v2068_v30 = vpop.f32.mrb[99].mxu0 }
 0x360   : > { %v2145_v55 = vmul.f32 %v2068_v30, %v3774_v61 }
 0x361   : > { %v3106_v31 = vpack.c.bf16 %v2147_v29, %v2146_v25 }
 0x362   : > { %v3100_v57 = vpack.c.bf16 %v2145_v55, %v2144_v28 }
 0x364   : > { %v3090_v32 = vpop.f32.mrb[100].mxu0  ;;  %3102 = vmatprep.subr.msk.bf16.mxu1 %vm3857_vm1, %v3100_v57 }
 0x365   : > { %v2150_v58 = vmul.f32 %v3090_v32, %v3776_v62  ;;  %v2081_v59 = vpop.f32.mrb[101].mxu0  ;;  %3105 = vmatpush3.bf16.xpose.msk.msra.mxu1 %vm3857_vm1, %v3103_v37 }
 0x366   : > { %v2148_v60 = vmul.f32 %v2081_v59, %v3778_v63  ;;  %v3091_v61 = vpop.f32.mrb[102].mxu0  ;;  %3108 = vmatprep.subr.msk.bf16.mxu1 %vm3857_vm1, %v3106_v31 }
 0x367   : > { %v2151_v33 = vmul.f32 %v3091_v61, %v3780_v0  ;;  %v2084_v34 = vpop.f32.mrb[103].mxu0 }
 0x368   : > { %v2149_v35 = vmul.f32 %v2084_v34, %v3782_v1 }
 0x369   : > { %v3118_v38 = vpack.c.bf16 %v2151_v33, %v2150_v58 }
 0x36a   : > { %v3112_v43 = vpack.c.bf16 %v2149_v35, %v2148_v60 }
 0x36c   : > { %v3094_v40 = vpop.f32.mrb[104].mxu0 }
 0x36d   : > { %v2154_v62 = vmul.f32 %v3094_v40, %v3784_v2  ;;  %v2097_v44 = vpop.f32.mrb[105].mxu0  ;;  %3111 = vmatpush3.bf16.xpose.msk.msra.mxu1 %vm3857_vm1, %v3109_v36 }
 0x36e   : > { %v2152_v63 = vmul.f32 %v2097_v44, %v3786_v3  ;;  %v3095_v37 = vpop.f32.mrb[106].mxu0  ;;  %3114 = vmatprep.subr.msk.bf16.mxu1 %vm3857_vm1, %v3112_v43 }
 0x36f   : > { %v2155_v0 = vmul.f32 %v3095_v37, %v3788_v4  ;;  %v2100_v45 = vpop.f32.mrb[107].mxu0 }
 0x370   : > { %v2153_v1 = vmul.f32 %v2100_v45, %v3790_v5 }
 0x371   : > { %v3130_v42 = vpack.c.bf16 %v2155_v0, %v2154_v62 }
 0x372   : > { %v3124_v47 = vpack.c.bf16 %v2153_v1, %v2152_v63 }
 0x374   : > { %v3098_v48 = vpop.f32.mrb[108].mxu0 }
 0x375   : > { %v2158_v2 = vmul.f32 %v3098_v48, %v3792_v6  ;;  %v2113_v12 = vpop.f32.mrb[109].mxu0  ;;  %3117 = vmatpush3.bf16.xpose.msk.msra.mxu1 %vm3857_vm1, %v3115_v10  ;;  %v3422_v6 = vmov 1966171168  }
 0x376   : > { %v2156_v3 = vmul.f32 %v2113_v12, %v3794_v7  ;;  %v3099_v36 = vpop.f32.mrb[110].mxu0  ;;  %3120 = vmatprep.subr.msk.bf16.mxu1 %vm3857_vm1, %v3118_v38  ;;  %v2335_v7 = vunpack.c.l.s4 %v3422_v6 }
 0x377   : > { %v2159_v4 = vmul.f32 %v3099_v36, %v3796_v8  ;;  %v2116_v49 = vpop.f32.mrb[111].mxu0  ;;  %v2337_v8 = vlaneseq }
 0x378   : > { %v2157_v5 = vmul.f32 %v2116_v49, %v3798_v9  ;;  %v2336_v9 = vunpack.c.0.s8 %v2335_v7 }
 0x379   : > { %v3142_v50 = vpack.c.bf16 %v2159_v4, %v2158_v2  ;;  %v2338_v39 = vshrl.u32 %v2337_v8, 7  ;;  %vm2351_vm2 = vcmp.lt.s32.totalorder %v2337_v8, 256 }
 0x37a   : > { %v3136_v14 = vpack.c.bf16 %v2157_v5, %v2156_v3 }
 0x37d   : > { %3123 = vmatpush3.bf16.xpose.msk.msra.mxu1 %vm3857_vm1, %v3121_v46  ;;  %v2339_v46 = vsub.s32 %v2336_v9, %v2338_v39 }
 0x37e   : > { %3126 = vmatprep.subr.msk.bf16.mxu1 %vm3857_vm1, %v3124_v47 }
 0x385   : > { %3129 = vmatpush3.bf16.xpose.msk.msra.mxu1 %vm3857_vm1, %v3127_v16 }
 0x386   : > { %3132 = vmatprep.subr.msk.bf16.mxu1 %vm3857_vm1, %v3130_v42 }
 0x38d   : > { %3135 = vmatpush3.bf16.xpose.msk.msra.mxu1 %vm3857_vm1, %v3133_v15 }
 0x38e   : > { %3138 = vmatprep.subr.msk.bf16.mxu1 %vm3857_vm1, %v3136_v14 }
 0x395   : > { %3141 = vmatpush3.bf16.xpose.msk.msra.mxu1 %vm3857_vm1, %v3139_v22 }
 0x396   : > { %3144 = vmatprep.subr.msk.bf16.mxu1 %vm3857_vm1, %v3142_v50 }
 0x39d   : > { %3147 = vmatpush3.bf16.xpose.msk.msra.mxu1 %vm3857_vm1, %v3145_v21 }
 0x3a4   : > { %2955 = vmatmul.mubr.msk.f32.vlgmr.msra.gmra.mrb[112].mxu1 %vm2160_vm0, %v3421_v27 }
 0x477   : > { %v2326_v41 = vpop.f32.mrb[112].mxu1 }
 0x478   : > { %v2328_v10 = vpop.f32.mrb[113].mxu1 }
 0x479   : > { %v2333_v11 = vcombine.low %v2326_v41, %v2328_v10 }
 0x47b   : > { %v2340_v13 = vrot.slane %v2333_v11, %v2339_v46 }
 0x47d   : > { %v2347_v15 = vrot.slane %v2340_v13, %v2339_v46 }
 0x47f   : > { %2353 = vst.msk [vmem:[%s308_s19] sm:$0x3] %vm2351_vm2, %v2347_v15 }
 0x480   : > { %3370 = shalt.err (!%p3367_p3)
}
 0x481   : > { %s3371_s15 = scalar_lea.hbm %s3918_s21, 32  ;;  %s3375_s16 = scalar_lea.hbm %s3967_s7, 64 }
 0x482   : > { %p3372_p4 = scmp.ne.s32.totalorder %s3918_s21, %s3371_s15  ;;  %p3376_p9 = scmp.lt.u32.totalorder %s3918_s21, %s3967_s7 }
 0x483   : > { %p3377_p10 = scmp.lt.u32.totalorder %s3375_s16, %s3371_s15  ;;  %p3379_p12 = scmp.lt.u32.totalorder %s3371_s15, %s3918_s21 }
 0x484   : > { %p3373_p7 = pnand %p3372_p4, %p3499_p5 }
 0x485   : > { %p3378_p11 = por %p3377_p10, %p3376_p9 }
 0x486   : > { %p3374_p8 = pneg %p3373_p7 }
 0x487   : > { %p3380_p13 = por %p3379_p12, %p3378_p11 }
 0x489   : > { %p3381_p0 = pnand %p3380_p13, %p3374_p8 }
 0x48b   : > { %3384 = shalt.err (!%p3381_p0)
}
 0x48c   : > { %3164 = dma.vmem_to_hbm [thread:$0]  (%p3499_p5), %s3920_s17, 32, %s3918_s21, %s2355_s23  }
 0x48d PF: > { %p3170_p1 = scmp.ge.s32.totalorder %s3419_s27, 2  ;;  %s2381_s20 = sand.u32 1, %s3407_s24  }
 0x48e   : > { %s2382_s29 = scalar_lea.sflag [#allocation3], %s2381_s20 }
 0x48f   : > { %p3167_p2 = pnand %p3170_p1, %p3503_p6 }
 0x491   : > { %3402 = dma.done.wait (!%p3167_p2), %s2382_s29, 32  }
 0x492   : > { %3404 = vsyncadd (!%p3167_p2), %s2382_s29, 4294967264  ;;  %p17_p3 = scmp.ge.s32.totalorder %s3487_s30, 4   ;;  %s3972_s24 = smov %s3411_s25 }
 0x493   : > { %s3973_s25 = smov %s3415_s26  ;;  %s3974_s26 = smov %s3497_s10 }
 0x494   : > { %s3975_s27 = smov %s3487_s30  ;;  %19 = sbr.rel (!%p17_p3) target bundleno = 3 (0x3), region = 89 }
 0x49b   :  { %2387 = vsyncpa [#allocation3], 1 }
 0x49c   :  { %2389 = vsyncpa [#allocation3 + $0x1], 1 }

</bundles_post_ra>
